<compile_context>
chip_gen: v5e
topology: v5e:2x2
jax: 0.10.0
libtpu: 0.0.40
codegen_flags: <defaults>
</compile_context>

<pallas_src>
import functools
import math

import jax
import jax.numpy as jnp
from jax import lax
from jax.experimental import pallas as pl
from jax.experimental.pallas import tpu as pltpu


def _round_up(x, m):
    return (x + m - 1) // m * m


# ----------------------------- Pallas kernels ------------------------------ #

def _lstm_maxpool_body(x_ref, wih_ref, whh_ref, b_ref, xg_ref, *, bp, hp, length):
    """Shared LSTM recurrence + max-pool. Returns the (bp, hp) pooled state."""
    # Hoisted input projection: one MXU-friendly matmul for all timesteps,
    # written to VMEM scratch (keeps it out of vregs and off the serial path).
    xg_ref[...] = (
        jnp.dot(x_ref[...], wih_ref[...], preferred_element_type=jnp.float32)
        + b_ref[...]
    )

    def step(t, carry):
        h, c, m = carry
        off = pl.multiple_of(t * bp, bp)                     # sublane-aligned
        gates = xg_ref[pl.ds(off, bp), :] + jnp.dot(
            h.astype(jnp.bfloat16), whh_ref[...],
            preferred_element_type=jnp.float32)              # (bp, 4*hp)
        # Gate order i, f, g, o (PyTorch); each slice is a full 128-lane tile.
        i_g = jax.nn.sigmoid(gates[:, 0 * hp:1 * hp])
        f_g = jax.nn.sigmoid(gates[:, 1 * hp:2 * hp])
        g_g = jnp.tanh(gates[:, 2 * hp:3 * hp])
        o_g = jax.nn.sigmoid(gates[:, 3 * hp:4 * hp])
        c = f_g * c + i_g * g_g
        h = o_g * jnp.tanh(c)
        m = jnp.maximum(m, h)                                # running max-pool
        return h, c, m

    h0 = jnp.zeros((bp, hp), jnp.float32)
    c0 = jnp.zeros((bp, hp), jnp.float32)
    m0 = jnp.full((bp, hp), -jnp.inf, jnp.float32)
    unroll = True if length <= 16 else 4                     # avoid vreg blowup
    _, _, m = lax.fori_loop(0, length, step, (h0, c0, m0), unroll=unroll)
    return m


def _encode_kernel(x_ref, wih_ref, whh_ref, b_ref, out_ref, xg_ref,
                   *, bp, hp, length):
    out_ref[...] = _lstm_maxpool_body(
        x_ref, wih_ref, whh_ref, b_ref, xg_ref, bp=bp, hp=hp, length=length)


def _triplet_kernel(x_ref, wih_ref, whh_ref, b_ref, out_ref, xg_ref,
                    *, batch, bp, hp, length):
    m = _lstm_maxpool_body(
        x_ref, wih_ref, whh_ref, b_ref, xg_ref, bp=bp, hp=hp, length=length)

    # Epilogue: cosine triplet loss fused into the same kernel.
    eps = 1e-12
    v1 = m[0 * batch:1 * batch, :]                           # anchor
    v2 = m[1 * batch:2 * batch, :]                           # positive
    v3 = m[2 * batch:3 * batch, :]                           # negative

    def normalize(v):                                        # F.normalize(dim=1)
        ss = jnp.sum(v * v, axis=1, keepdims=True)
        return v * lax.rsqrt(jnp.maximum(ss, eps * eps))     # rsqrt -> EUP

    n1, n2, n3 = normalize(v1), normalize(v2), normalize(v3)
    ap = 1.0 - jnp.sum(n1 * n2, axis=1, keepdims=True)       # (B, 1)
    an = 1.0 - jnp.sum(n1 * n3, axis=1, keepdims=True)       # (B, 1)
    diff = ap - an + 0.1                                     # margin = 0.1
    pos = diff > 0.0
    num = jnp.sum(jnp.where(pos, diff, 0.0), axis=0, keepdims=True)   # (1, 1)
    den = jnp.sum(pos.astype(jnp.float32), axis=0, keepdims=True)     # (1, 1)
    out_ref[...] = num / den          # NaN if no positive entries (torch.mean of empty)


# ------------------------------ JAX wrappers -------------------------------- #

def _embed_time_major(ids, emb_p, bp):
    """ids (B, L) int32 -> x2d (L*bp, Hp) bf16, row index = t*bp + b."""
    b, length = ids.shape
    ids_p = jnp.zeros((bp, length), jnp.int32).at[:b, :].set(ids)   # pad with id 0
    ids_tm = jnp.transpose(ids_p).reshape(-1)                       # tiny int transpose
    x = jnp.take(emb_p, ids_tm, axis=0)                             # (L*bp, Hp) glue gather
    return x.astype(jnp.bfloat16)


def sentence_encode(params, hidden_size, ids):
    """ids: (B, L) int32 -> (B, hidden_size) float32 sentence vectors."""
    emb_p, w_ih_p, w_hh_p, b_p = params
    hp = emb_p.shape[1]
    b, length = ids.shape
    bp = _round_up(b, 8)
    x = _embed_time_major(ids, emb_p, bp)
    kernel = functools.partial(_encode_kernel, bp=bp, hp=hp, length=length)
    vecs = pl.pallas_call(
        kernel,
        out_shape=jax.ShapeDtypeStruct((bp, hp), jnp.float32),
        scratch_shapes=[pltpu.VMEM((length * bp, 4 * hp), jnp.float32)],
    )(x, w_ih_p, w_hh_p, b_p)
    return vecs[:b, :hidden_size]


def siamese_forward(params, hidden_size, a_ids, p_ids=None, n_ids=None):
    """Mirrors SiameseNetwork.forward: triplet loss if p/n given, else encoding."""
    if p_ids is None:
        return sentence_encode(params, hidden_size, a_ids)

    emb_p, w_ih_p, w_hh_p, b_p = params
    hp = emb_p.shape[1]
    b, length = a_ids.shape
    ids = jnp.concatenate([a_ids, p_ids, n_ids], axis=0)     # (3B, L) -> one LSTM call
    bp = _round_up(3 * b, 8)
    x = _embed_time_major(ids, emb_p, bp)
    kernel = functools.partial(
        _triplet_kernel, batch=b, bp=bp, hp=hp, length=length)
    loss = pl.pallas_call(
        kernel,
        out_shape=jax.ShapeDtypeStruct((1, 1), jnp.float32),
        scratch_shapes=[pltpu.VMEM((length * bp, 4 * hp), jnp.float32)],
    )(x, w_ih_p, w_hh_p, b_p)
    return loss[0, 0]


# ------------------------------ Param init ---------------------------------- #

def _pad_gate_weight(w, h, hp):
    """w: (4H, H) PyTorch layout -> (Hp, 4Hp) transposed + per-gate zero-padded."""
    wp = jnp.zeros((hp, 4 * hp), jnp.float32)
    for k in range(4):
        blk = jnp.transpose(w[k * h:(k + 1) * h, :])         # (H, H)
        wp = wp.at[:h, k * hp:k * hp + h].set(blk)
    return wp


def _pad_gate_bias(bias, h, hp):
    bp = jnp.zeros((1, 4 * hp), jnp.float32)
    for k in range(4):
        bp = bp.at[0, k * hp:k * hp + h].set(bias[k * h:(k + 1) * h])
    return bp


def init_params(key, hidden_size, vocab_size):
    h = hidden_size
    hp = max(128, _round_up(h, 128))          # lane-aligned padded hidden size
    v = vocab_size + 1                        # matches config['vocab_size'] + 1
    k_emb, k_wih, k_whh, k_bih, k_bhh = jax.random.split(key, 5)

    emb = 0.1 * jax.random.normal(k_emb, (v, h), dtype=jnp.float32)
    emb = emb.at[0].set(0.0)                  # padding_idx=0

    bound = 1.0 / math.sqrt(h)                # PyTorch LSTM default init range
    w_ih = jax.random.uniform(k_wih, (4 * h, h), jnp.float32, -bound, bound)
    w_hh = jax.random.uniform(k_whh, (4 * h, h), jnp.float32, -bound, bound)
    b_ih = jax.random.uniform(k_bih, (4 * h,), jnp.float32, -bound, bound)
    b_hh = jax.random.uniform(k_bhh, (4 * h,), jnp.float32, -bound, bound)

    emb_p = jnp.zeros((v, hp), jnp.float32).at[:, :h].set(emb)
    w_ih_p = _pad_gate_weight(w_ih, h, hp).astype(jnp.bfloat16)   # bf16 MXU inputs
    w_hh_p = _pad_gate_weight(w_hh, h, hp).astype(jnp.bfloat16)
    b_p = _pad_gate_bias(b_ih + b_hh, h, hp)                      # f32 bias
    return (emb_p, w_ih_p, w_hh_p, b_p)


# --------------------------------- main -------------------------------------- #

if __name__ == "__main__":
    config = dict(hidden_size=32, vocab_size=30, max_length=8)
    B, L, H = 2, config["max_length"], config["hidden_size"]

    key = jax.random.PRNGKey(0)
    k_param, k_a, k_p, k_n = jax.random.split(key, 4)
    params = init_params(k_param, config["hidden_size"], config["vocab_size"])

    a_ids = jax.random.randint(k_a, (B, L), 0, config["vocab_size"] + 1, jnp.int32)
    p_ids = jax.random.randint(k_p, (B, L), 0, config["vocab_size"] + 1, jnp.int32)
    n_ids = jax.random.randint(k_n, (B, L), 0, config["vocab_size"] + 1, jnp.int32)

    # training path: single fused LSTM + max-pool + triplet-loss kernel call
    loss = siamese_forward(params, H, a_ids, p_ids, n_ids)
    jax.block_until_ready(loss)

    # encode-only path (forward(a) with p=None)
    vecs = siamese_forward(params, H, a_ids)
    jax.block_until_ready(vecs)

    print("KERNEL_OK")
</pallas_src>

<mosaic_0001>
module attributes {stable_mosaic.version = 11 : i64} {
  func.func @_triplet_kernel(%arg0: memref<64x128xbf16, #tpu.memory_space<vmem>>, %arg1: memref<128x512xbf16, #tpu.memory_space<vmem>>, %arg2: memref<128x512xbf16, #tpu.memory_space<vmem>>, %arg3: memref<1x512xf32, #tpu.memory_space<vmem>>, %arg4: memref<1x1xf32, #tpu.memory_space<vmem>>, %arg5: memref<64x512xf32, #tpu.memory_space<vmem>>) attributes {dimension_semantics = [], scalar_prefetch = 0 : i64, scratch_operands = 1 : i64, tpu.core_type = #tpu.core_type<tc>} {
    %c0 = arith.constant 0 : index
    %c0_0 = arith.constant 0 : index
    %0 = vector.load %arg0[%c0, %c0_0] : memref<64x128xbf16, #tpu.memory_space<vmem>>, vector<64x128xbf16>
    %c0_1 = arith.constant 0 : index
    %c0_2 = arith.constant 0 : index
    %1 = vector.load %arg1[%c0_1, %c0_2] : memref<128x512xbf16, #tpu.memory_space<vmem>>, vector<128x512xbf16>
    %cst = arith.constant dense<0.000000e+00> : vector<64x512xf32>
    %2 = tpu.matmul %0, %1, %cst {dimension_numbers = #tpu.dot_dimension_numbers<[1], [0], [0], [1], [0, 0, 1, 1], [], []>} : vector<64x128xbf16>, vector<128x512xbf16>, vector<64x512xf32> -> vector<64x512xf32>
    %c0_3 = arith.constant 0 : index
    %c0_4 = arith.constant 0 : index
    %3 = vector.load %arg3[%c0_3, %c0_4] : memref<1x512xf32, #tpu.memory_space<vmem>>, vector<1x512xf32>
    %4 = vector.broadcast %3 : vector<1x512xf32> to vector<64x512xf32>
    %5 = arith.addf %2, %4 : vector<64x512xf32>
    %c0_5 = arith.constant 0 : index
    %c0_6 = arith.constant 0 : index
    %6 = vector.load %arg5[%c0_5, %c0_6] : memref<64x512xf32, #tpu.memory_space<vmem>>, vector<64x512xf32>
    tpu.vector_store %arg5[%c0_5, %c0_6], %5 {strides = array<i32>} : memref<64x512xf32, #tpu.memory_space<vmem>>, vector<64x512xf32>,
    %cst_7 = arith.constant 0.000000e+00 : f32
    %7 = vector.broadcast %cst_7 : f32 to vector<8x128xf32>
    %cst_8 = arith.constant 0.000000e+00 : f32
    %8 = vector.broadcast %cst_8 : f32 to vector<8x128xf32>
    %cst_9 = arith.constant 0xFF800000 : f32
    %9 = vector.broadcast %cst_9 : f32 to vector<8x128xf32>
    %c0_i32 = arith.constant 0 : i32
    %c8_i32 = arith.constant 8 : i32
    %10 = arith.muli %c0_i32, %c8_i32 : i32
    %11 = tpu.assume_multiple %10, 8 : i32
    %12 = arith.index_cast %11 : i32 to index
    %c0_10 = arith.constant 0 : index
    %13 = vector.load %arg5[%12, %c0_10] : memref<64x512xf32, #tpu.memory_space<vmem>>, vector<8x512xf32>
    %14 = arith.truncf %7 : vector<8x128xf32> to vector<8x128xbf16>
    %c0_11 = arith.constant 0 : index
    %c0_12 = arith.constant 0 : index
    %15 = vector.load %arg2[%c0_11, %c0_12] : memref<128x512xbf16, #tpu.memory_space<vmem>>, vector<128x512xbf16>
    %cst_13 = arith.constant dense<0.000000e+00> : vector<8x512xf32>
    %16 = tpu.matmul %14, %15, %cst_13 {dimension_numbers = #tpu.dot_dimension_numbers<[1], [0], [0], [1], [0, 0, 1, 1], [], []>} : vector<8x128xbf16>, vector<128x512xbf16>, vector<8x512xf32> -> vector<8x512xf32>
    %17 = arith.addf %13, %16 : vector<8x512xf32>
    %18 = vector.extract_strided_slice %17 {offsets = [0, 0], sizes = [8, 128], strides = [1, 1]} : vector<8x512xf32> to vector<8x128xf32>
    %19 = arith.negf %18 : vector<8x128xf32>
    %20 = math.exp %19 : vector<8x128xf32>
    %cst_14 = arith.constant 1.000000e+00 : f32
    %21 = vector.broadcast %cst_14 : f32 to vector<8x128xf32>
    %22 = arith.addf %21, %20 : vector<8x128xf32>
    %23 = arith.divf %21, %22 : vector<8x128xf32>
    %24 = vector.extract_strided_slice %17 {offsets = [0, 128], sizes = [8, 128], strides = [1, 1]} : vector<8x512xf32> to vector<8x128xf32>
    %25 = arith.negf %24 : vector<8x128xf32>
    %26 = math.exp %25 : vector<8x128xf32>
    %cst_15 = arith.constant 1.000000e+00 : f32
    %27 = vector.broadcast %cst_15 : f32 to vector<8x128xf32>
    %28 = arith.addf %27, %26 : vector<8x128xf32>
    %29 = arith.divf %27, %28 : vector<8x128xf32>
    %30 = vector.extract_strided_slice %17 {offsets = [0, 256], sizes = [8, 128], strides = [1, 1]} : vector<8x512xf32> to vector<8x128xf32>
    %31 = math.tanh %30 : vector<8x128xf32>
    %32 = vector.extract_strided_slice %17 {offsets = [0, 384], sizes = [8, 128], strides = [1, 1]} : vector<8x512xf32> to vector<8x128xf32>
    %33 = arith.negf %32 : vector<8x128xf32>
    %34 = math.exp %33 : vector<8x128xf32>
    %cst_16 = arith.constant 1.000000e+00 : f32
    %35 = vector.broadcast %cst_16 : f32 to vector<8x128xf32>
    %36 = arith.addf %35, %34 : vector<8x128xf32>
    %37 = arith.divf %35, %36 : vector<8x128xf32>
    %38 = arith.mulf %29, %8 : vector<8x128xf32>
    %39 = arith.mulf %23, %31 : vector<8x128xf32>
    %40 = arith.addf %38, %39 : vector<8x128xf32>
    %41 = math.tanh %40 : vector<8x128xf32>
    %42 = arith.mulf %37, %41 : vector<8x128xf32>
    %43 = arith.maximumf %9, %42 : vector<8x128xf32>
    %c1_i32 = arith.constant 1 : i32
    %c8_i32_17 = arith.constant 8 : i32
    %44 = arith.muli %c1_i32, %c8_i32_17 : i32
    %45 = tpu.assume_multiple %44, 8 : i32
    %46 = arith.index_cast %45 : i32 to index
    %c0_18 = arith.constant 0 : index
    %47 = vector.load %arg5[%46, %c0_18] : memref<64x512xf32, #tpu.memory_space<vmem>>, vector<8x512xf32>
    %48 = arith.truncf %42 : vector<8x128xf32> to vector<8x128xbf16>
    %c0_19 = arith.constant 0 : index
    %c0_20 = arith.constant 0 : index
    %49 = vector.load %arg2[%c0_19, %c0_20] : memref<128x512xbf16, #tpu.memory_space<vmem>>, vector<128x512xbf16>
    %cst_21 = arith.constant dense<0.000000e+00> : vector<8x512xf32>
    %50 = tpu.matmul %48, %49, %cst_21 {dimension_numbers = #tpu.dot_dimension_numbers<[1], [0], [0], [1], [0, 0, 1, 1], [], []>} : vector<8x128xbf16>, vector<128x512xbf16>, vector<8x512xf32> -> vector<8x512xf32>
    %51 = arith.addf %47, %50 : vector<8x512xf32>
    %52 = vector.extract_strided_slice %51 {offsets = [0, 0], sizes = [8, 128], strides = [1, 1]} : vector<8x512xf32> to vector<8x128xf32>
    %53 = arith.negf %52 : vector<8x128xf32>
    %54 = math.exp %53 : vector<8x128xf32>
    %cst_22 = arith.constant 1.000000e+00 : f32
    %55 = vector.broadcast %cst_22 : f32 to vector<8x128xf32>
    %56 = arith.addf %55, %54 : vector<8x128xf32>
    %57 = arith.divf %55, %56 : vector<8x128xf32>
    %58 = vector.extract_strided_slice %51 {offsets = [0, 128], sizes = [8, 128], strides = [1, 1]} : vector<8x512xf32> to vector<8x128xf32>
    %59 = arith.negf %58 : vector<8x128xf32>
    %60 = math.exp %59 : vector<8x128xf32>
    %cst_23 = arith.constant 1.000000e+00 : f32
    %61 = vector.broadcast %cst_23 : f32 to vector<8x128xf32>
    %62 = arith.addf %61, %60 : vector<8x128xf32>
    %63 = arith.divf %61, %62 : vector<8x128xf32>
    %64 = vector.extract_strided_slice %51 {offsets = [0, 256], sizes = [8, 128], strides = [1, 1]} : vector<8x512xf32> to vector<8x128xf32>
    %65 = math.tanh %64 : vector<8x128xf32>
    %66 = vector.extract_strided_slice %51 {offsets = [0, 384], sizes = [8, 128], strides = [1, 1]} : vector<8x512xf32> to vector<8x128xf32>
    %67 = arith.negf %66 : vector<8x128xf32>
    %68 = math.exp %67 : vector<8x128xf32>
    %cst_24 = arith.constant 1.000000e+00 : f32
    %69 = vector.broadcast %cst_24 : f32 to vector<8x128xf32>
    %70 = arith.addf %69, %68 : vector<8x128xf32>
    %71 = arith.divf %69, %70 : vector<8x128xf32>
    %72 = arith.mulf %63, %40 : vector<8x128xf32>
    %73 = arith.mulf %57, %65 : vector<8x128xf32>
    %74 = arith.addf %72, %73 : vector<8x128xf32>
    %75 = math.tanh %74 : vector<8x128xf32>
    %76 = arith.mulf %71, %75 : vector<8x128xf32>
    %77 = arith.maximumf %43, %76 : vector<8x128xf32>
    %c2_i32 = arith.constant 2 : i32
    %c8_i32_25 = arith.constant 8 : i32
    %78 = arith.muli %c2_i32, %c8_i32_25 : i32
    %79 = tpu.assume_multiple %78, 8 : i32
    %80 = arith.index_cast %79 : i32 to index
    %c0_26 = arith.constant 0 : index
    %81 = vector.load %arg5[%80, %c0_26] : memref<64x512xf32, #tpu.memory_space<vmem>>, vector<8x512xf32>
    %82 = arith.truncf %76 : vector<8x128xf32> to vector<8x128xbf16>
    %c0_27 = arith.constant 0 : index
    %c0_28 = arith.constant 0 : index
    %83 = vector.load %arg2[%c0_27, %c0_28] : memref<128x512xbf16, #tpu.memory_space<vmem>>, vector<128x512xbf16>
    %cst_29 = arith.constant dense<0.000000e+00> : vector<8x512xf32>
    %84 = tpu.matmul %82, %83, %cst_29 {dimension_numbers = #tpu.dot_dimension_numbers<[1], [0], [0], [1], [0, 0, 1, 1], [], []>} : vector<8x128xbf16>, vector<128x512xbf16>, vector<8x512xf32> -> vector<8x512xf32>
    %85 = arith.addf %81, %84 : vector<8x512xf32>
    %86 = vector.extract_strided_slice %85 {offsets = [0, 0], sizes = [8, 128], strides = [1, 1]} : vector<8x512xf32> to vector<8x128xf32>
    %87 = arith.negf %86 : vector<8x128xf32>
    %88 = math.exp %87 : vector<8x128xf32>
    %cst_30 = arith.constant 1.000000e+00 : f32
    %89 = vector.broadcast %cst_30 : f32 to vector<8x128xf32>
    %90 = arith.addf %89, %88 : vector<8x128xf32>
    %91 = arith.divf %89, %90 : vector<8x128xf32>
    %92 = vector.extract_strided_slice %85 {offsets = [0, 128], sizes = [8, 128], strides = [1, 1]} : vector<8x512xf32> to vector<8x128xf32>
    %93 = arith.negf %92 : vector<8x128xf32>
    %94 = math.exp %93 : vector<8x128xf32>
    %cst_31 = arith.constant 1.000000e+00 : f32
    %95 = vector.broadcast %cst_31 : f32 to vector<8x128xf32>
    %96 = arith.addf %95, %94 : vector<8x128xf32>
    %97 = arith.divf %95, %96 : vector<8x128xf32>
    %98 = vector.extract_strided_slice %85 {offsets = [0, 256], sizes = [8, 128], strides = [1, 1]} : vector<8x512xf32> to vector<8x128xf32>
    %99 = math.tanh %98 : vector<8x128xf32>
    %100 = vector.extract_strided_slice %85 {offsets = [0, 384], sizes = [8, 128], strides = [1, 1]} : vector<8x512xf32> to vector<8x128xf32>
    %101 = arith.negf %100 : vector<8x128xf32>
    %102 = math.exp %101 : vector<8x128xf32>
    %cst_32 = arith.constant 1.000000e+00 : f32
    %103 = vector.broadcast %cst_32 : f32 to vector<8x128xf32>
    %104 = arith.addf %103, %102 : vector<8x128xf32>
    %105 = arith.divf %103, %104 : vector<8x128xf32>
    %106 = arith.mulf %97, %74 : vector<8x128xf32>
    %107 = arith.mulf %91, %99 : vector<8x128xf32>
    %108 = arith.addf %106, %107 : vector<8x128xf32>
    %109 = math.tanh %108 : vector<8x128xf32>
    %110 = arith.mulf %105, %109 : vector<8x128xf32>
    %111 = arith.maximumf %77, %110 : vector<8x128xf32>
    %c3_i32 = arith.constant 3 : i32
    %c8_i32_33 = arith.constant 8 : i32
    %112 = arith.muli %c3_i32, %c8_i32_33 : i32
    %113 = tpu.assume_multiple %112, 8 : i32
    %114 = arith.index_cast %113 : i32 to index
    %c0_34 = arith.constant 0 : index
    %115 = vector.load %arg5[%114, %c0_34] : memref<64x512xf32, #tpu.memory_space<vmem>>, vector<8x512xf32>
    %116 = arith.truncf %110 : vector<8x128xf32> to vector<8x128xbf16>
    %c0_35 = arith.constant 0 : index
    %c0_36 = arith.constant 0 : index
    %117 = vector.load %arg2[%c0_35, %c0_36] : memref<128x512xbf16, #tpu.memory_space<vmem>>, vector<128x512xbf16>
    %cst_37 = arith.constant dense<0.000000e+00> : vector<8x512xf32>
    %118 = tpu.matmul %116, %117, %cst_37 {dimension_numbers = #tpu.dot_dimension_numbers<[1], [0], [0], [1], [0, 0, 1, 1], [], []>} : vector<8x128xbf16>, vector<128x512xbf16>, vector<8x512xf32> -> vector<8x512xf32>
    %119 = arith.addf %115, %118 : vector<8x512xf32>
    %120 = vector.extract_strided_slice %119 {offsets = [0, 0], sizes = [8, 128], strides = [1, 1]} : vector<8x512xf32> to vector<8x128xf32>
    %121 = arith.negf %120 : vector<8x128xf32>
    %122 = math.exp %121 : vector<8x128xf32>
    %cst_38 = arith.constant 1.000000e+00 : f32
    %123 = vector.broadcast %cst_38 : f32 to vector<8x128xf32>
    %124 = arith.addf %123, %122 : vector<8x128xf32>
    %125 = arith.divf %123, %124 : vector<8x128xf32>
    %126 = vector.extract_strided_slice %119 {offsets = [0, 128], sizes = [8, 128], strides = [1, 1]} : vector<8x512xf32> to vector<8x128xf32>
    %127 = arith.negf %126 : vector<8x128xf32>
    %128 = math.exp %127 : vector<8x128xf32>
    %cst_39 = arith.constant 1.000000e+00 : f32
    %129 = vector.broadcast %cst_39 : f32 to vector<8x128xf32>
    %130 = arith.addf %129, %128 : vector<8x128xf32>
    %131 = arith.divf %129, %130 : vector<8x128xf32>
    %132 = vector.extract_strided_slice %119 {offsets = [0, 256], sizes = [8, 128], strides = [1, 1]} : vector<8x512xf32> to vector<8x128xf32>
    %133 = math.tanh %132 : vector<8x128xf32>
    %134 = vector.extract_strided_slice %119 {offsets = [0, 384], sizes = [8, 128], strides = [1, 1]} : vector<8x512xf32> to vector<8x128xf32>
    %135 = arith.negf %134 : vector<8x128xf32>
    %136 = math.exp %135 : vector<8x128xf32>
    %cst_40 = arith.constant 1.000000e+00 : f32
    %137 = vector.broadcast %cst_40 : f32 to vector<8x128xf32>
    %138 = arith.addf %137, %136 : vector<8x128xf32>
    %139 = arith.divf %137, %138 : vector<8x128xf32>
    %140 = arith.mulf %131, %108 : vector<8x128xf32>
    %141 = arith.mulf %125, %133 : vector<8x128xf32>
    %142 = arith.addf %140, %141 : vector<8x128xf32>
    %143 = math.tanh %142 : vector<8x128xf32>
    %144 = arith.mulf %139, %143 : vector<8x128xf32>
    %145 = arith.maximumf %111, %144 : vector<8x128xf32>
    %c4_i32 = arith.constant 4 : i32
    %c8_i32_41 = arith.constant 8 : i32
    %146 = arith.muli %c4_i32, %c8_i32_41 : i32
    %147 = tpu.assume_multiple %146, 8 : i32
    %148 = arith.index_cast %147 : i32 to index
    %c0_42 = arith.constant 0 : index
    %149 = vector.load %arg5[%148, %c0_42] : memref<64x512xf32, #tpu.memory_space<vmem>>, vector<8x512xf32>
    %150 = arith.truncf %144 : vector<8x128xf32> to vector<8x128xbf16>
    %c0_43 = arith.constant 0 : index
    %c0_44 = arith.constant 0 : index
    %151 = vector.load %arg2[%c0_43, %c0_44] : memref<128x512xbf16, #tpu.memory_space<vmem>>, vector<128x512xbf16>
    %cst_45 = arith.constant dense<0.000000e+00> : vector<8x512xf32>
    %152 = tpu.matmul %150, %151, %cst_45 {dimension_numbers = #tpu.dot_dimension_numbers<[1], [0], [0], [1], [0, 0, 1, 1], [], []>} : vector<8x128xbf16>, vector<128x512xbf16>, vector<8x512xf32> -> vector<8x512xf32>
    %153 = arith.addf %149, %152 : vector<8x512xf32>
    %154 = vector.extract_strided_slice %153 {offsets = [0, 0], sizes = [8, 128], strides = [1, 1]} : vector<8x512xf32> to vector<8x128xf32>
    %155 = arith.negf %154 : vector<8x128xf32>
    %156 = math.exp %155 : vector<8x128xf32>
    %cst_46 = arith.constant 1.000000e+00 : f32
    %157 = vector.broadcast %cst_46 : f32 to vector<8x128xf32>
    %158 = arith.addf %157, %156 : vector<8x128xf32>
    %159 = arith.divf %157, %158 : vector<8x128xf32>
    %160 = vector.extract_strided_slice %153 {offsets = [0, 128], sizes = [8, 128], strides = [1, 1]} : vector<8x512xf32> to vector<8x128xf32>
    %161 = arith.negf %160 : vector<8x128xf32>
    %162 = math.exp %161 : vector<8x128xf32>
    %cst_47 = arith.constant 1.000000e+00 : f32
    %163 = vector.broadcast %cst_47 : f32 to vector<8x128xf32>
    %164 = arith.addf %163, %162 : vector<8x128xf32>
    %165 = arith.divf %163, %164 : vector<8x128xf32>
    %166 = vector.extract_strided_slice %153 {offsets = [0, 256], sizes = [8, 128], strides = [1, 1]} : vector<8x512xf32> to vector<8x128xf32>
    %167 = math.tanh %166 : vector<8x128xf32>
    %168 = vector.extract_strided_slice %153 {offsets = [0, 384], sizes = [8, 128], strides = [1, 1]} : vector<8x512xf32> to vector<8x128xf32>
    %169 = arith.negf %168 : vector<8x128xf32>
    %170 = math.exp %169 : vector<8x128xf32>
    %cst_48 = arith.constant 1.000000e+00 : f32
    %171 = vector.broadcast %cst_48 : f32 to vector<8x128xf32>
    %172 = arith.addf %171, %170 : vector<8x128xf32>
    %173 = arith.divf %171, %172 : vector<8x128xf32>
    %174 = arith.mulf %165, %142 : vector<8x128xf32>
    %175 = arith.mulf %159, %167 : vector<8x128xf32>
    %176 = arith.addf %174, %175 : vector<8x128xf32>
    %177 = math.tanh %176 : vector<8x128xf32>
    %178 = arith.mulf %173, %177 : vector<8x128xf32>
    %179 = arith.maximumf %145, %178 : vector<8x128xf32>
    %c5_i32 = arith.constant 5 : i32
    %c8_i32_49 = arith.constant 8 : i32
    %180 = arith.muli %c5_i32, %c8_i32_49 : i32
    %181 = tpu.assume_multiple %180, 8 : i32
    %182 = arith.index_cast %181 : i32 to index
    %c0_50 = arith.constant 0 : index
    %183 = vector.load %arg5[%182, %c0_50] : memref<64x512xf32, #tpu.memory_space<vmem>>, vector<8x512xf32>
    %184 = arith.truncf %178 : vector<8x128xf32> to vector<8x128xbf16>
    %c0_51 = arith.constant 0 : index
    %c0_52 = arith.constant 0 : index
    %185 = vector.load %arg2[%c0_51, %c0_52] : memref<128x512xbf16, #tpu.memory_space<vmem>>, vector<128x512xbf16>
    %cst_53 = arith.constant dense<0.000000e+00> : vector<8x512xf32>
    %186 = tpu.matmul %184, %185, %cst_53 {dimension_numbers = #tpu.dot_dimension_numbers<[1], [0], [0], [1], [0, 0, 1, 1], [], []>} : vector<8x128xbf16>, vector<128x512xbf16>, vector<8x512xf32> -> vector<8x512xf32>
    %187 = arith.addf %183, %186 : vector<8x512xf32>
    %188 = vector.extract_strided_slice %187 {offsets = [0, 0], sizes = [8, 128], strides = [1, 1]} : vector<8x512xf32> to vector<8x128xf32>
    %189 = arith.negf %188 : vector<8x128xf32>
    %190 = math.exp %189 : vector<8x128xf32>
    %cst_54 = arith.constant 1.000000e+00 : f32
    %191 = vector.broadcast %cst_54 : f32 to vector<8x128xf32>
    %192 = arith.addf %191, %190 : vector<8x128xf32>
    %193 = arith.divf %191, %192 : vector<8x128xf32>
    %194 = vector.extract_strided_slice %187 {offsets = [0, 128], sizes = [8, 128], strides = [1, 1]} : vector<8x512xf32> to vector<8x128xf32>
    %195 = arith.negf %194 : vector<8x128xf32>
    %196 = math.exp %195 : vector<8x128xf32>
    %cst_55 = arith.constant 1.000000e+00 : f32
    %197 = vector.broadcast %cst_55 : f32 to vector<8x128xf32>
    %198 = arith.addf %197, %196 : vector<8x128xf32>
    %199 = arith.divf %197, %198 : vector<8x128xf32>
    %200 = vector.extract_strided_slice %187 {offsets = [0, 256], sizes = [8, 128], strides = [1, 1]} : vector<8x512xf32> to vector<8x128xf32>
    %201 = math.tanh %200 : vector<8x128xf32>
    %202 = vector.extract_strided_slice %187 {offsets = [0, 384], sizes = [8, 128], strides = [1, 1]} : vector<8x512xf32> to vector<8x128xf32>
    %203 = arith.negf %202 : vector<8x128xf32>
    %204 = math.exp %203 : vector<8x128xf32>
    %cst_56 = arith.constant 1.000000e+00 : f32
    %205 = vector.broadcast %cst_56 : f32 to vector<8x128xf32>
    %206 = arith.addf %205, %204 : vector<8x128xf32>
    %207 = arith.divf %205, %206 : vector<8x128xf32>
    %208 = arith.mulf %199, %176 : vector<8x128xf32>
    %209 = arith.mulf %193, %201 : vector<8x128xf32>
    %210 = arith.addf %208, %209 : vector<8x128xf32>
    %211 = math.tanh %210 : vector<8x128xf32>
    %212 = arith.mulf %207, %211 : vector<8x128xf32>
    %213 = arith.maximumf %179, %212 : vector<8x128xf32>
    %c6_i32 = arith.constant 6 : i32
    %c8_i32_57 = arith.constant 8 : i32
    %214 = arith.muli %c6_i32, %c8_i32_57 : i32
    %215 = tpu.assume_multiple %214, 8 : i32
    %216 = arith.index_cast %215 : i32 to index
    %c0_58 = arith.constant 0 : index
    %217 = vector.load %arg5[%216, %c0_58] : memref<64x512xf32, #tpu.memory_space<vmem>>, vector<8x512xf32>
    %218 = arith.truncf %212 : vector<8x128xf32> to vector<8x128xbf16>
    %c0_59 = arith.constant 0 : index
    %c0_60 = arith.constant 0 : index
    %219 = vector.load %arg2[%c0_59, %c0_60] : memref<128x512xbf16, #tpu.memory_space<vmem>>, vector<128x512xbf16>
    %cst_61 = arith.constant dense<0.000000e+00> : vector<8x512xf32>
    %220 = tpu.matmul %218, %219, %cst_61 {dimension_numbers = #tpu.dot_dimension_numbers<[1], [0], [0], [1], [0, 0, 1, 1], [], []>} : vector<8x128xbf16>, vector<128x512xbf16>, vector<8x512xf32> -> vector<8x512xf32>
    %221 = arith.addf %217, %220 : vector<8x512xf32>
    %222 = vector.extract_strided_slice %221 {offsets = [0, 0], sizes = [8, 128], strides = [1, 1]} : vector<8x512xf32> to vector<8x128xf32>
    %223 = arith.negf %222 : vector<8x128xf32>
    %224 = math.exp %223 : vector<8x128xf32>
    %cst_62 = arith.constant 1.000000e+00 : f32
    %225 = vector.broadcast %cst_62 : f32 to vector<8x128xf32>
    %226 = arith.addf %225, %224 : vector<8x128xf32>
    %227 = arith.divf %225, %226 : vector<8x128xf32>
    %228 = vector.extract_strided_slice %221 {offsets = [0, 128], sizes = [8, 128], strides = [1, 1]} : vector<8x512xf32> to vector<8x128xf32>
    %229 = arith.negf %228 : vector<8x128xf32>
    %230 = math.exp %229 : vector<8x128xf32>
    %cst_63 = arith.constant 1.000000e+00 : f32
    %231 = vector.broadcast %cst_63 : f32 to vector<8x128xf32>
    %232 = arith.addf %231, %230 : vector<8x128xf32>
    %233 = arith.divf %231, %232 : vector<8x128xf32>
    %234 = vector.extract_strided_slice %221 {offsets = [0, 256], sizes = [8, 128], strides = [1, 1]} : vector<8x512xf32> to vector<8x128xf32>
    %235 = math.tanh %234 : vector<8x128xf32>
    %236 = vector.extract_strided_slice %221 {offsets = [0, 384], sizes = [8, 128], strides = [1, 1]} : vector<8x512xf32> to vector<8x128xf32>
    %237 = arith.negf %236 : vector<8x128xf32>
    %238 = math.exp %237 : vector<8x128xf32>
    %cst_64 = arith.constant 1.000000e+00 : f32
    %239 = vector.broadcast %cst_64 : f32 to vector<8x128xf32>
    %240 = arith.addf %239, %238 : vector<8x128xf32>
    %241 = arith.divf %239, %240 : vector<8x128xf32>
    %242 = arith.mulf %233, %210 : vector<8x128xf32>
    %243 = arith.mulf %227, %235 : vector<8x128xf32>
    %244 = arith.addf %242, %243 : vector<8x128xf32>
    %245 = math.tanh %244 : vector<8x128xf32>
    %246 = arith.mulf %241, %245 : vector<8x128xf32>
    %247 = arith.maximumf %213, %246 : vector<8x128xf32>
    %c7_i32 = arith.constant 7 : i32
    %c8_i32_65 = arith.constant 8 : i32
    %248 = arith.muli %c7_i32, %c8_i32_65 : i32
    %249 = tpu.assume_multiple %248, 8 : i32
    %250 = arith.index_cast %249 : i32 to index
    %c0_66 = arith.constant 0 : index
    %251 = vector.load %arg5[%250, %c0_66] : memref<64x512xf32, #tpu.memory_space<vmem>>, vector<8x512xf32>
    %252 = arith.truncf %246 : vector<8x128xf32> to vector<8x128xbf16>
    %c0_67 = arith.constant 0 : index
    %c0_68 = arith.constant 0 : index
    %253 = vector.load %arg2[%c0_67, %c0_68] : memref<128x512xbf16, #tpu.memory_space<vmem>>, vector<128x512xbf16>
    %cst_69 = arith.constant dense<0.000000e+00> : vector<8x512xf32>
    %254 = tpu.matmul %252, %253, %cst_69 {dimension_numbers = #tpu.dot_dimension_numbers<[1], [0], [0], [1], [0, 0, 1, 1], [], []>} : vector<8x128xbf16>, vector<128x512xbf16>, vector<8x512xf32> -> vector<8x512xf32>
    %255 = arith.addf %251, %254 : vector<8x512xf32>
    %256 = vector.extract_strided_slice %255 {offsets = [0, 0], sizes = [8, 128], strides = [1, 1]} : vector<8x512xf32> to vector<8x128xf32>
    %257 = arith.negf %256 : vector<8x128xf32>
    %258 = math.exp %257 : vector<8x128xf32>
    %cst_70 = arith.constant 1.000000e+00 : f32
    %259 = vector.broadcast %cst_70 : f32 to vector<8x128xf32>
    %260 = arith.addf %259, %258 : vector<8x128xf32>
    %261 = arith.divf %259, %260 : vector<8x128xf32>
    %262 = vector.extract_strided_slice %255 {offsets = [0, 128], sizes = [8, 128], strides = [1, 1]} : vector<8x512xf32> to vector<8x128xf32>
    %263 = arith.negf %262 : vector<8x128xf32>
    %264 = math.exp %263 : vector<8x128xf32>
    %cst_71 = arith.constant 1.000000e+00 : f32
    %265 = vector.broadcast %cst_71 : f32 to vector<8x128xf32>
    %266 = arith.addf %265, %264 : vector<8x128xf32>
    %267 = arith.divf %265, %266 : vector<8x128xf32>
    %268 = vector.extract_strided_slice %255 {offsets = [0, 256], sizes = [8, 128], strides = [1, 1]} : vector<8x512xf32> to vector<8x128xf32>
    %269 = math.tanh %268 : vector<8x128xf32>
    %270 = vector.extract_strided_slice %255 {offsets = [0, 384], sizes = [8, 128], strides = [1, 1]} : vector<8x512xf32> to vector<8x128xf32>
    %271 = arith.negf %270 : vector<8x128xf32>
    %272 = math.exp %271 : vector<8x128xf32>
    %cst_72 = arith.constant 1.000000e+00 : f32
    %273 = vector.broadcast %cst_72 : f32 to vector<8x128xf32>
    %274 = arith.addf %273, %272 : vector<8x128xf32>
    %275 = arith.divf %273, %274 : vector<8x128xf32>
    %276 = arith.mulf %267, %244 : vector<8x128xf32>
    %277 = arith.mulf %261, %269 : vector<8x128xf32>
    %278 = arith.addf %276, %277 : vector<8x128xf32>
    %279 = math.tanh %278 : vector<8x128xf32>
    %280 = arith.mulf %275, %279 : vector<8x128xf32>
    %281 = arith.maximumf %247, %280 : vector<8x128xf32>
    %c8_i32_73 = arith.constant 8 : i32
    %282 = vector.extract_strided_slice %281 {offsets = [0, 0], sizes = [2, 128], strides = [1, 1]} : vector<8x128xf32> to vector<2x128xf32>
    %283 = vector.extract_strided_slice %281 {offsets = [2, 0], sizes = [2, 128], strides = [1, 1]} : vector<8x128xf32> to vector<2x128xf32>
    %284 = vector.extract_strided_slice %281 {offsets = [4, 0], sizes = [2, 128], strides = [1, 1]} : vector<8x128xf32> to vector<2x128xf32>
    %285 = arith.mulf %282, %282 : vector<2x128xf32>
    %cst_74 = arith.constant dense<0.000000e+00> : vector<2xf32>
    %286 = vector.multi_reduction <add>, %285, %cst_74 [1] : vector<2x128xf32> to vector<2xf32>
    %287 = vector.shape_cast %286 : vector<2xf32> to vector<2x1xf32>
    %cst_75 = arith.constant 1.000000e-24 : f32
    %288 = vector.broadcast %cst_75 : f32 to vector<2x1xf32>
    %289 = arith.maximumf %287, %288 : vector<2x1xf32>
    %290 = math.rsqrt %289 : vector<2x1xf32>
    %291 = vector.broadcast %290 : vector<2x1xf32> to vector<2x128xf32>
    %292 = arith.mulf %282, %291 : vector<2x128xf32>
    %293 = arith.mulf %283, %283 : vector<2x128xf32>
    %cst_76 = arith.constant dense<0.000000e+00> : vector<2xf32>
    %294 = vector.multi_reduction <add>, %293, %cst_76 [1] : vector<2x128xf32> to vector<2xf32>
    %295 = vector.shape_cast %294 : vector<2xf32> to vector<2x1xf32>
    %cst_77 = arith.constant 1.000000e-24 : f32
    %296 = vector.broadcast %cst_77 : f32 to vector<2x1xf32>
    %297 = arith.maximumf %295, %296 : vector<2x1xf32>
    %298 = math.rsqrt %297 : vector<2x1xf32>
    %299 = vector.broadcast %298 : vector<2x1xf32> to vector<2x128xf32>
    %300 = arith.mulf %283, %299 : vector<2x128xf32>
    %301 = arith.mulf %284, %284 : vector<2x128xf32>
    %cst_78 = arith.constant dense<0.000000e+00> : vector<2xf32>
    %302 = vector.multi_reduction <add>, %301, %cst_78 [1] : vector<2x128xf32> to vector<2xf32>
    %303 = vector.shape_cast %302 : vector<2xf32> to vector<2x1xf32>
    %cst_79 = arith.constant 1.000000e-24 : f32
    %304 = vector.broadcast %cst_79 : f32 to vector<2x1xf32>
    %305 = arith.maximumf %303, %304 : vector<2x1xf32>
    %306 = math.rsqrt %305 : vector<2x1xf32>
    %307 = vector.broadcast %306 : vector<2x1xf32> to vector<2x128xf32>
    %308 = arith.mulf %284, %307 : vector<2x128xf32>
    %309 = arith.mulf %292, %300 : vector<2x128xf32>
    %cst_80 = arith.constant dense<0.000000e+00> : vector<2xf32>
    %310 = vector.multi_reduction <add>, %309, %cst_80 [1] : vector<2x128xf32> to vector<2xf32>
    %311 = vector.shape_cast %310 : vector<2xf32> to vector<2x1xf32>
    %cst_81 = arith.constant 1.000000e+00 : f32
    %312 = vector.broadcast %cst_81 : f32 to vector<2x1xf32>
    %313 = arith.subf %312, %311 : vector<2x1xf32>
    %314 = arith.mulf %292, %308 : vector<2x128xf32>
    %cst_82 = arith.constant dense<0.000000e+00> : vector<2xf32>
    %315 = vector.multi_reduction <add>, %314, %cst_82 [1] : vector<2x128xf32> to vector<2xf32>
    %316 = vector.shape_cast %315 : vector<2xf32> to vector<2x1xf32>
    %cst_83 = arith.constant 1.000000e+00 : f32
    %317 = vector.broadcast %cst_83 : f32 to vector<2x1xf32>
    %318 = arith.subf %317, %316 : vector<2x1xf32>
    %319 = arith.subf %313, %318 : vector<2x1xf32>
    %cst_84 = arith.constant 1.000000e-01 : f32
    %320 = vector.broadcast %cst_84 : f32 to vector<2x1xf32>
    %321 = arith.addf %319, %320 : vector<2x1xf32>
    %cst_85 = arith.constant 0.000000e+00 : f32
    %322 = vector.broadcast %cst_85 : f32 to vector<2x1xf32>
    %323 = arith.cmpf ogt, %321, %322 : vector<2x1xf32>
    %cst_86 = arith.constant 0.000000e+00 : f32
    %324 = vector.broadcast %cst_86 : f32 to vector<2x1xf32>
    %325 = arith.select %323, %321, %324 : vector<2x1xi1>, vector<2x1xf32>
    %cst_87 = arith.constant dense<0.000000e+00> : vector<1xf32>
    %326 = vector.multi_reduction <add>, %325, %cst_87 [0] : vector<2x1xf32> to vector<1xf32>
    %327 = vector.shape_cast %326 : vector<1xf32> to vector<1x1xf32>
    %328 = arith.extui %323 : vector<2x1xi1> to vector<2x1xi32>
    %329 = arith.sitofp %328 : vector<2x1xi32> to vector<2x1xf32>
    %cst_88 = arith.constant dense<0.000000e+00> : vector<1xf32>
    %330 = vector.multi_reduction <add>, %329, %cst_88 [0] : vector<2x1xf32> to vector<1xf32>
    %331 = vector.shape_cast %330 : vector<1xf32> to vector<1x1xf32>
    %332 = arith.divf %327, %331 : vector<1x1xf32>
    %c0_89 = arith.constant 0 : index
    %c0_90 = arith.constant 0 : index
    %333 = vector.load %arg4[%c0_89, %c0_90] : memref<1x1xf32, #tpu.memory_space<vmem>>, vector<1x1xf32>
    tpu.vector_store %arg4[%c0_89, %c0_90], %332 {strides = array<i32>} : memref<1x1xf32, #tpu.memory_space<vmem>>, vector<1x1xf32>,
    return
  }
}

</mosaic_0001>

<bundles_post_ra>
// kernel: tpu_custom_call.1
= control target key start
LH: loop header
LB: loop body
LE: loop exit
PB: predicated region body
PF: predicated region fallthrough
CT: control target
= control target key end

     0   :  { %9 = vsyncpa [#allocation4], 0  ;;  %s2993_s0 = inlined_call_operand.hbm [shape: bf16[64,128], index: 0, kind: input, shape index: {}]   ;;  %s2994_s1 = inlined_call_operand.hbm [shape: bf16[128,512], index: 1, kind: input, shape index: {}]   ;;  %s2995_s2 = inlined_call_operand.hbm [shape: bf16[128,512], index: 2, kind: input, shape index: {}]   ;;  %s2996_s3 = inlined_call_operand.hbm [shape: f32[1,512], index: 3, kind: input, shape index: {}]   ;;  %s2997_s4 = inlined_call_operand.hbm [shape: f32[1,1], index: 4, kind: output, shape index: {}]  }
   0x1   :  { %10 = vsyncpa [#allocation7], 0 }
   0x2   :  { %11 = vsyncpa [#allocation10], 0  ;;  %s30_s17 = sshll.u32 %s2994_s1, 4  ;;  %s31_s17 = int_to_ptr.hbm [resolvable:$true] %s30_s17 }
   0x3   :  { %12 = vsyncpa [#allocation5], 0  ;;  %s2444_s18 = smov [#allocation6]   ;;  %s17_s22 = sshll.u32 %s2993_s0, 4  ;;  %s18_s22 = int_to_ptr.hbm [resolvable:$true] %s17_s22 }
   0x4   :  { %s32_s19 = sshll.u32 %s2444_s18, 4  ;;  %s2445_s23 = smov 256   ;;  %s33_s19 = int_to_ptr.vmem [resolvable:$true] %s32_s19 }
   0x5   :  { %s2446_s24 = smov 16   ;;  %s2447_s25 = smov [#allocation3]  }
   0x6   :  { %38 = dma.hbm_to_vmem [thread:$0]  %s31_s17, 4096, %s33_s19, [#allocation7], %s2445_s23, %s2445_s23, %s2446_s24  }
   0x7   :  { %s19_s26 = sshll.u32 %s2447_s25, 4  ;;  %s2448_s27 = smov 64   ;;  %s20_s26 = int_to_ptr.vmem [resolvable:$true] %s19_s26 }
   0x8   :  { %s2449_s28 = smov 4   ;;  %s43_s30 = sshll.u32 %s2995_s2, 4  ;;  %s44_s30 = int_to_ptr.hbm [resolvable:$true] %s43_s30 }
   0x9   :  { %25 = dma.hbm_to_vmem [thread:$0]  %s18_s22, 512, %s20_s26, [#allocation4], %s2448_s27, %s2448_s27, %s2449_s28  }
   0xa   :  { %s2450_s5 = smov [#allocation8]   ;;  %s57_s8 = sshll.u32 %s2996_s3, 4  ;;  %s58_s8 = int_to_ptr.hbm [resolvable:$true] %s57_s8 }
   0xb   :  { %s45_s6 = sshll.u32 %s2450_s5, 4  ;;  %s2451_s9 = smov [#allocation9]   ;;  %s46_s6 = int_to_ptr.vmem [resolvable:$true] %s45_s6 }
   0xc   :  { %51 = dma.hbm_to_vmem [thread:$0]  %s44_s30, 4096, %s46_s6, [#allocation7], %s2445_s23, %s2445_s23, %s2446_s24  }
   0xd   :  { %s59_s10 = sshll.u32 %s2451_s9, 4  ;;  %s60_s10 = int_to_ptr.vmem [resolvable:$true] %s59_s10 }
   0xe   :  { %62 = dma.hbm_to_vmem [thread:$0]  %s58_s8, 64, %s60_s10, [#allocation10]  }
   0xf   :  { %2436 = dma.done.wait [#allocation4], 512  }
  0x10   :  { %2437 = vsyncadd [#allocation4], 4294966784 }
  0x11   :  { %2438 = dma.done.wait [#allocation7], 8192  }
  0x12   :  { %2439 = vsyncadd [#allocation7], 4294959104 }
  0x13   :  { %2440 = dma.done.wait [#allocation10], 64  }
  0x14   :  { %2441 = vsyncadd [#allocation10], 4294967232  ;;  %v1934_v0 = vld [vmem:[#allocation6 + $0xe0] sm:$0xf]  ;;  %v2135_v1 = vld [vmem:[#allocation6 + $0xec] sm:$0xf0] }
  0x15   :  { %v2133_v2 = vld [vmem:[#allocation6 + $0xe4] sm:$0xf]  ;;  %v1935_v3 = vor.u32 %v2135_v1, %v1934_v0  ;;  %v1936_v4 = vld [vmem:[#allocation6 + $0xf0] sm:$0xf0]  ;;  %v1942_v5 = vld [vmem:[#allocation6 + $0xe8] sm:$0xf] }
  0x16   :  { %v2136_v6 = vld [vmem:[#allocation6 + $0xf4] sm:$0xf0]  ;;  %v1939_v7 = vor.u32 %v2133_v2, %v1936_v4  ;;  %v2134_v9 = vld [vmem:[#allocation6 + $0xec] sm:$0xf]  ;;  %v1944_v10 = vld [vmem:[#allocation6 + $0xf8] sm:$0xf0] }
  0x17   :  { %v1943_v8 = vor.u32 %v2136_v6, %v1942_v5  ;;  %v1918_v11 = vld [vmem:[#allocation6 + $0xc0] sm:$0xf]  ;;  %314 = vmatpush.bf16.msra.mxu0 %v1935_v3  ;;  %v1947_v12 = vor.u32 %v2134_v9, %v1944_v10  ;;  %v2131_v13 = vld [vmem:[#allocation6 + $0xcc] sm:$0xf0]  ;;  %v2129_v14 = vld [vmem:[#allocation6 + $0xc4] sm:$0xf] }
  0x18   :  { %v1920_v15 = vld [vmem:[#allocation6 + $0xd0] sm:$0xf0]  ;;  %343 = vmatpush.bf16.msra.mxu1 %v1939_v7  ;;  %v1919_v16 = vor.u32 %v2131_v13, %v1918_v11  ;;  %v1926_v18 = vld [vmem:[#allocation6 + $0xc8] sm:$0xf]  ;;  %v2132_v19 = vld [vmem:[#allocation6 + $0xd4] sm:$0xf0] }
  0x19   :  { %372 = vmatpush.bf16.msra.mxu2 %v1943_v8  ;;  %v1923_v17 = vor.u32 %v2129_v14, %v1920_v15  ;;  %v2130_v20 = vld [vmem:[#allocation6 + $0xcc] sm:$0xf]  ;;  %401 = vmatpush.bf16.msra.mxu3 %v1947_v12  ;;  %v1927_v21 = vor.u32 %v2132_v19, %v1926_v18  ;;  %v1928_v22 = vld [vmem:[#allocation6 + $0xd8] sm:$0xf0]  ;;  %v1902_v23 = vld [vmem:[#allocation6 + $0xa0] sm:$0xf] }
  0x1a   :  { %v2127_v24 = vld [vmem:[#allocation6 + $0xac] sm:$0xf0]  ;;  %v1931_v25 = vor.u32 %v2130_v20, %v1928_v22  ;;  %v2125_v26 = vld [vmem:[#allocation6 + $0xa4] sm:$0xf]  ;;  %v1904_v27 = vld [vmem:[#allocation6 + $0xb0] sm:$0xf0] }
  0x1b   :  { %v1910_v28 = vld [vmem:[#allocation6 + $0xa8] sm:$0xf]  ;;  %315 = vmatpush.bf16.msra.mxu0 %v1919_v16  ;;  %v1903_v29 = vor.u32 %v2127_v24, %v1902_v23  ;;  %v2128_v30 = vld [vmem:[#allocation6 + $0xb4] sm:$0xf0]  ;;  %v2126_v31 = vld [vmem:[#allocation6 + $0xac] sm:$0xf]  ;;  %v1907_v33 = vor.u32 %v2125_v26, %v1904_v27 }
  0x1c   :  { %v1912_v32 = vld [vmem:[#allocation6 + $0xb8] sm:$0xf0]  ;;  %344 = vmatpush.bf16.msra.mxu1 %v1923_v17  ;;  %v1911_v34 = vor.u32 %v2128_v30, %v1910_v28  ;;  %v1886_v35 = vld [vmem:[#allocation6 + $0x80] sm:$0xf]  ;;  %v2123_v36 = vld [vmem:[#allocation6 + $0x8c] sm:$0xf0] }
  0x1d   :  { %373 = vmatpush.bf16.msra.mxu2 %v1927_v21  ;;  %v2121_v37 = vld [vmem:[#allocation6 + $0x84] sm:$0xf]  ;;  %402 = vmatpush.bf16.msra.mxu3 %v1931_v25  ;;  %v1915_v38 = vor.u32 %v2126_v31, %v1912_v32  ;;  %v1888_v39 = vld [vmem:[#allocation6 + $0x90] sm:$0xf0]  ;;  %v1894_v40 = vld [vmem:[#allocation6 + $0x88] sm:$0xf]  ;;  %v1887_v44 = vor.u32 %v2123_v36, %v1886_v35 }
  0x1e   :  { %v2124_v41 = vld [vmem:[#allocation6 + $0x94] sm:$0xf0]  ;;  %v2122_v42 = vld [vmem:[#allocation6 + $0x8c] sm:$0xf]  ;;  %v1896_v43 = vld [vmem:[#allocation6 + $0x98] sm:$0xf0]  ;;  %v1891_v45 = vor.u32 %v2121_v37, %v1888_v39 }
  0x1f   :  { %316 = vmatpush.bf16.msra.mxu0 %v1903_v29  ;;  %v1895_v46 = vor.u32 %v2124_v41, %v1894_v40  ;;  %v1870_v47 = vld [vmem:[#allocation6 + $0x60] sm:$0xf]  ;;  %v2119_v48 = vld [vmem:[#allocation6 + $0x6c] sm:$0xf0]  ;;  %v2117_v49 = vld [vmem:[#allocation6 + $0x64] sm:$0xf]  ;;  %v1899_v50 = vor.u32 %v2122_v42, %v1896_v43 }
  0x20   :  { %345 = vmatpush.bf16.msra.mxu1 %v1907_v33  ;;  %v1872_v51 = vld [vmem:[#allocation6 + $0x70] sm:$0xf0]  ;;  %v1878_v52 = vld [vmem:[#allocation6 + $0x68] sm:$0xf]  ;;  %v2120_v53 = vld [vmem:[#allocation6 + $0x74] sm:$0xf0]  ;;  %v1871_v56 = vor.u32 %v2119_v48, %v1870_v47 }
  0x21   :  { %374 = vmatpush.bf16.msra.mxu2 %v1911_v34  ;;  %403 = vmatpush.bf16.msra.mxu3 %v1915_v38  ;;  %v2118_v54 = vld [vmem:[#allocation6 + $0x6c] sm:$0xf]  ;;  %v1880_v55 = vld [vmem:[#allocation6 + $0x78] sm:$0xf0]  ;;  %v1875_v57 = vor.u32 %v2117_v49, %v1872_v51  ;;  %v1879_v58 = vor.u32 %v2120_v53, %v1878_v52  ;;  %v1854_v59 = vld [vmem:[#allocation6 + $0x40] sm:$0xf] }
  0x22   :  { %v2115_v60 = vld [vmem:[#allocation6 + $0x4c] sm:$0xf0]  ;;  %v2113_v61 = vld [vmem:[#allocation6 + $0x44] sm:$0xf]  ;;  %v1883_v62 = vor.u32 %v2118_v54, %v1880_v55  ;;  %v1856_v63 = vld [vmem:[#allocation6 + $0x50] sm:$0xf0] }
  0x23   :  { %317 = vmatpush.bf16.msra.mxu0 %v1887_v44  ;;  %v1862_v0 = vld [vmem:[#allocation6 + $0x48] sm:$0xf]  ;;  %v2116_v1 = vld [vmem:[#allocation6 + $0x54] sm:$0xf0]  ;;  %v2114_v2 = vld [vmem:[#allocation6 + $0x4c] sm:$0xf]  ;;  %v1855_v4 = vor.u32 %v2115_v60, %v1854_v59  ;;  %v1859_v5 = vor.u32 %v2113_v61, %v1856_v63 }
  0x24   :  { %346 = vmatpush.bf16.msra.mxu1 %v1891_v45  ;;  %v1864_v3 = vld [vmem:[#allocation6 + $0x58] sm:$0xf0]  ;;  %v1863_v6 = vor.u32 %v2116_v1, %v1862_v0  ;;  %v1838_v7 = vld [vmem:[#allocation6 + $0x20] sm:$0xf]  ;;  %v2111_v8 = vld [vmem:[#allocation6 + $0x2c] sm:$0xf0] }
  0x25   :  { %375 = vmatpush.bf16.msra.mxu2 %v1895_v46  ;;  %404 = vmatpush.bf16.msra.mxu3 %v1899_v50  ;;  %v2109_v9 = vld [vmem:[#allocation6 + $0x24] sm:$0xf]  ;;  %v1867_v10 = vor.u32 %v2114_v2, %v1864_v3  ;;  %v1840_v11 = vld [vmem:[#allocation6 + $0x30] sm:$0xf0]  ;;  %v1846_v12 = vld [vmem:[#allocation6 + $0x28] sm:$0xf]  ;;  %v1839_v16 = vor.u32 %v2111_v8, %v1838_v7 }
  0x26   :  { %v2112_v13 = vld [vmem:[#allocation6 + $0x34] sm:$0xf0]  ;;  %v2110_v14 = vld [vmem:[#allocation6 + $0x2c] sm:$0xf]  ;;  %v1848_v15 = vld [vmem:[#allocation6 + $0x38] sm:$0xf0]  ;;  %v1843_v18 = vor.u32 %v2109_v9, %v1840_v11 }
  0x27   :  { %318 = vmatpush.bf16.msra.mxu0 %v1871_v56  ;;  %v1822_v17 = vld [vmem:[#allocation6] sm:$0xf]  ;;  %v1847_v19 = vor.u32 %v2112_v13, %v1846_v12  ;;  %v2107_v20 = vld [vmem:[#allocation6 + $0xc] sm:$0xf0]  ;;  %v2105_v21 = vld [vmem:[#allocation6 + $0x4] sm:$0xf]  ;;  %v1851_v23 = vor.u32 %v2110_v14, %v1848_v15 }
  0x28   :  { %347 = vmatpush.bf16.msra.mxu1 %v1875_v57  ;;  %v1824_v22 = vld [vmem:[#allocation6 + $0x10] sm:$0xf0]  ;;  %v1830_v24 = vld [vmem:[#allocation6 + $0x8] sm:$0xf]  ;;  %v2108_v25 = vld [vmem:[#allocation6 + $0x14] sm:$0xf0]  ;;  %v1823_v30 = vor.u32 %v2107_v20, %v1822_v17 }
  0x29   :  { %376 = vmatpush.bf16.msra.mxu2 %v1879_v58  ;;  %405 = vmatpush.bf16.msra.mxu3 %v1883_v62  ;;  %v2106_v26 = vld [vmem:[#allocation6 + $0xc] sm:$0xf]  ;;  %v1832_v27 = vld [vmem:[#allocation6 + $0x18] sm:$0xf0]  ;;  %v2062_v28 = vld [vmem:[#allocation8 + $0xe0] sm:$0xf]  ;;  %v1827_v33 = vor.u32 %v2105_v21, %v1824_v22  ;;  %v1831_v34 = vor.u32 %v2108_v25, %v1830_v24 }
  0x2a   :  { %v2167_v29 = vld [vmem:[#allocation8 + $0xec] sm:$0xf0]  ;;  %v2165_v31 = vld [vmem:[#allocation8 + $0xe4] sm:$0xf]  ;;  %v2064_v32 = vld [vmem:[#allocation8 + $0xf0] sm:$0xf0]  ;;  %v1835_v36 = vor.u32 %v2106_v26, %v1832_v27 }
  0x2b   :  { %319 = vmatpush.bf16.msra.mxu0 %v1855_v4  ;;  %v2101_v35 = vld [vmem:[#allocation3] sm:$0xff]  ;;  %v2492_v37 = vor.u32 %v2167_v29, %v2062_v28  ;;  %v2166_v38 = vld [vmem:[#allocation8 + $0xec] sm:$0xf]  ;;  %v2070_v39 = vld [vmem:[#allocation8 + $0xe8] sm:$0xf]  ;;  %v2494_v41 = vor.u32 %v2165_v31, %v2064_v32  ;;  %s2454_s2 = smov [#allocation11]  }
  0x2c   :  { %348 = vmatpush.bf16.msra.mxu1 %v1859_v5  ;;  %v2168_v40 = vld [vmem:[#allocation8 + $0xf4] sm:$0xf0]  ;;  %v2072_v42 = vld [vmem:[#allocation8 + $0xf8] sm:$0xf0]  ;;  %v2046_v43 = vld [vmem:[#allocation8 + $0xc0] sm:$0xf] }
  0x2d   :  { %377 = vmatpush.bf16.msra.mxu2 %v1863_v6  ;;  %406 = vmatpush.bf16.msra.mxu3 %v1867_v10  ;;  %v2163_v44 = vld [vmem:[#allocation8 + $0xcc] sm:$0xf0]  ;;  %v2161_v45 = vld [vmem:[#allocation8 + $0xc4] sm:$0xf]  ;;  %v2048_v46 = vld [vmem:[#allocation8 + $0xd0] sm:$0xf0]  ;;  %v2496_v47 = vor.u32 %v2168_v40, %v2070_v39  ;;  %v2499_v48 = vor.u32 %v2166_v38, %v2072_v42 }
  0x2e   :  { %v2501_v49 = vor.u32 %v2163_v44, %v2046_v43  ;;  %v2162_v50 = vld [vmem:[#allocation8 + $0xcc] sm:$0xf]  ;;  %v2054_v51 = vld [vmem:[#allocation8 + $0xc8] sm:$0xf]  ;;  %v2164_v52 = vld [vmem:[#allocation8 + $0xd4] sm:$0xf0]  ;;  %v2504_v53 = vor.u32 %v2161_v45, %v2048_v46 }
  0x2f   :  { %320 = vmatpush.bf16.msra.mxu0 %v1839_v16  ;;  %v2056_v54 = vld [vmem:[#allocation8 + $0xd8] sm:$0xf0]  ;;  %v2030_v55 = vld [vmem:[#allocation8 + $0xa0] sm:$0xf]  ;;  %v2159_v56 = vld [vmem:[#allocation8 + $0xac] sm:$0xf0]  ;;  %v2507_v59 = vor.u32 %v2164_v52, %v2054_v51 }
  0x30   :  { %349 = vmatpush.bf16.msra.mxu1 %v1843_v18  ;;  %v2157_v57 = vld [vmem:[#allocation8 + $0xa4] sm:$0xf]  ;;  %v2032_v58 = vld [vmem:[#allocation8 + $0xb0] sm:$0xf0]  ;;  %v2511_v60 = vor.u32 %v2162_v50, %v2056_v54  ;;  %v2513_v61 = vor.u32 %v2159_v56, %v2030_v55  ;;  %v2158_v62 = vld [vmem:[#allocation8 + $0xac] sm:$0xf] }
  0x31   :  { %378 = vmatpush.bf16.msra.mxu2 %v1847_v19  ;;  %407 = vmatpush.bf16.msra.mxu3 %v1851_v23  ;;  %v2038_v63 = vld [vmem:[#allocation8 + $0xa8] sm:$0xf]  ;;  %v2160_v0 = vld [vmem:[#allocation8 + $0xb4] sm:$0xf0]  ;;  %v2516_v1 = vor.u32 %v2157_v57, %v2032_v58  ;;  %v2040_v2 = vld [vmem:[#allocation8 + $0xb8] sm:$0xf0] }
  0x32   :  { %v2014_v3 = vld [vmem:[#allocation8 + $0x80] sm:$0xf]  ;;  %v2155_v4 = vld [vmem:[#allocation8 + $0x8c] sm:$0xf0]  ;;  %v2153_v5 = vld [vmem:[#allocation8 + $0x84] sm:$0xf]  ;;  %v2519_v7 = vor.u32 %v2160_v0, %v2038_v63  ;;  %v2523_v8 = vor.u32 %v2158_v62, %v2040_v2 }
  0x33   :  { %321 = vmatpush.bf16.msra.mxu0 %v1823_v30  ;;  %v2016_v6 = vld [vmem:[#allocation8 + $0x90] sm:$0xf0]  ;;  %v2525_v9 = vor.u32 %v2155_v4, %v2014_v3  ;;  %v2154_v10 = vld [vmem:[#allocation8 + $0x8c] sm:$0xf]  ;;  %v2022_v11 = vld [vmem:[#allocation8 + $0x88] sm:$0xf] }
  0x34   :  { %350 = vmatpush.bf16.msra.mxu1 %v1827_v33  ;;  %v2156_v12 = vld [vmem:[#allocation8 + $0x94] sm:$0xf0]  ;;  %v2528_v13 = vor.u32 %v2153_v5, %v2016_v6  ;;  %v2024_v14 = vld [vmem:[#allocation8 + $0x98] sm:$0xf0]  ;;  %v1998_v15 = vld [vmem:[#allocation8 + $0x60] sm:$0xf] }
  0x35   :  { %379 = vmatpush.bf16.msra.mxu2 %v1831_v34  ;;  %408 = vmatpush.bf16.msra.mxu3 %v1835_v36  ;;  %v2151_v16 = vld [vmem:[#allocation8 + $0x6c] sm:$0xf0]  ;;  %v2149_v17 = vld [vmem:[#allocation8 + $0x64] sm:$0xf]  ;;  %v2000_v18 = vld [vmem:[#allocation8 + $0x70] sm:$0xf0]  ;;  %v2531_v20 = vor.u32 %v2156_v12, %v2022_v11  ;;  %v2535_v21 = vor.u32 %v2154_v10, %v2024_v14 }
  0x36   :  { %322 = vmatmul.bf16.vlgmr.msra.gmra.mxu0 %v2101_v35  ;;  %v2102_v19 = vld [vmem:[#allocation3 + $0x8] sm:$0xff]  ;;  %v2537_v22 = vor.u32 %v2151_v16, %v1998_v15  ;;  %v2152_v25 = vld [vmem:[#allocation8 + $0x74] sm:$0xf0]  ;;  %v2540_v26 = vor.u32 %v2149_v17, %v2000_v18  ;;  %v2008_v27 = vld [vmem:[#allocation8 + $0x78] sm:$0xf0]  ;;  %v2452_v18 = vmov 0  }
  0x37   :  { %661 = vmatpush.bf16.msrb.mxu0 %v2492_v37  ;;  %351 = vmatmul.bf16.vlgmr.msra.gmra.mxu1 %v2101_v35  ;;  %v2150_v23 = vld [vmem:[#allocation8 + $0x6c] sm:$0xf]  ;;  %v2006_v24 = vld [vmem:[#allocation8 + $0x68] sm:$0xf]  ;;  %v1982_v28 = vld [vmem:[#allocation8 + $0x40] sm:$0xf] }
  0x38   :  { %674 = vmatpush.bf16.msrb.mxu1 %v2494_v41  ;;  %380 = vmatmul.bf16.vlgmr.msra.gmra.mxu2 %v2101_v35  ;;  %v2147_v29 = vld [vmem:[#allocation8 + $0x4c] sm:$0xf0]  ;;  %v2145_v30 = vld [vmem:[#allocation8 + $0x44] sm:$0xf]  ;;  %v1984_v31 = vld [vmem:[#allocation8 + $0x50] sm:$0xf0]  ;;  %v2543_v32 = vor.u32 %v2152_v25, %v2006_v24  ;;  %v2547_v33 = vor.u32 %v2150_v23, %v2008_v27 }
  0x39   :  { %409 = vmatmul.bf16.vlgmr.msra.gmra.mxu3 %v2101_v35  ;;  %687 = vmatpush.bf16.msrb.mxu2 %v2496_v47  ;;  %v2549_v34 = vor.u32 %v2147_v29, %v1982_v28  ;;  %v2552_v35 = vor.u32 %v2145_v30, %v1984_v31  ;;  %v2146_v36 = vld [vmem:[#allocation8 + $0x4c] sm:$0xf]  ;;  %v1992_v38 = vld [vmem:[#allocation8 + $0x58] sm:$0xf0]  ;;  %v1966_v39 = vld [vmem:[#allocation8 + $0x20] sm:$0xf] }
  0x3a   :  { %700 = vmatpush.bf16.msrb.mxu3 %v2499_v48  ;;  %v2143_v40 = vld [vmem:[#allocation8 + $0x2c] sm:$0xf0]  ;;  %v2141_v42 = vld [vmem:[#allocation8 + $0x24] sm:$0xf]  ;;  %v2557_v43 = vor.u32 %v2146_v36, %v1992_v38  ;;  %v1968_v45 = vld [vmem:[#allocation8 + $0x30] sm:$0xf0] }
  0x3b   :  { %662 = vmatpush.bf16.msrb.mxu0 %v2501_v49  ;;  %v2559_v44 = vor.u32 %v2143_v40, %v1966_v39  ;;  %v1990_v46 = vld [vmem:[#allocation8 + $0x48] sm:$0xf]  ;;  %v2148_v50 = vld [vmem:[#allocation8 + $0x54] sm:$0xf0]  ;;  %v2562_v51 = vor.u32 %v2141_v42, %v1968_v45  ;;  %v2142_v54 = vld [vmem:[#allocation8 + $0x2c] sm:$0xf] }
  0x3c   :  { %675 = vmatpush.bf16.msrb.mxu1 %v2504_v53  ;;  %v2564_v52 = vor.u32 %v2148_v50, %v1990_v46  ;;  %v1976_v55 = vld [vmem:[#allocation8 + $0x38] sm:$0xf0]  ;;  %v1950_v56 = vld [vmem:[#allocation8] sm:$0xf]  ;;  %v2139_v57 = vld [vmem:[#allocation8 + $0xc] sm:$0xf0] }
  0x3d   :  { %688 = vmatpush.bf16.msrb.mxu2 %v2507_v59  ;;  %v2137_v58 = vld [vmem:[#allocation8 + $0x4] sm:$0xf]  ;;  %v1952_v62 = vld [vmem:[#allocation8 + $0x10] sm:$0xf0]  ;;  %v1974_v63 = vld [vmem:[#allocation8 + $0x28] sm:$0xf]  ;;  %v2569_v2 = vor.u32 %v2142_v54, %v1976_v55  ;;  %v2571_v3 = vor.u32 %v2139_v57, %v1950_v56 }
  0x3e   :  { %701 = vmatpush.bf16.msrb.mxu3 %v2511_v60  ;;  %v2144_v0 = vld [vmem:[#allocation8 + $0x34] sm:$0xf0]  ;;  %v1958_v5 = vld [vmem:[#allocation8 + $0x8] sm:$0xf]  ;;  %v2576_v10 = vor.u32 %v2137_v58, %v1952_v62  ;;  %v2138_v11 = vld [vmem:[#allocation8 + $0xc] sm:$0xf] }
  0x3f   :  { %663 = vmatpush.bf16.msrb.mxu0 %v2513_v61  ;;  %v2573_v4 = vor.u32 %v2144_v0, %v1974_v63  ;;  %v2140_v6 = vld [vmem:[#allocation8 + $0x14] sm:$0xf0]  ;;  %v1960_v12 = vld [vmem:[#allocation8 + $0x18] sm:$0xf0]  ;;  %v2103_v16 = vld [vmem:[#allocation3 + $0x10] sm:$0xff]  ;;  %s1783_s3 = sshll.u32 %s2454_s2, 4  ;;  %s1784_s3 = int_to_ptr.vmem [resolvable:$true] %s1783_s3 }
  0x40   :  { %676 = vmatpush.bf16.msrb.mxu1 %v2516_v1  ;;  %v2579_v14 = vor.u32 %v2140_v6, %v1958_v5  ;;  %v2583_v15 = vor.u32 %v2138_v11, %v1960_v12  ;;  %v2104_v17 = vld [vmem:[#allocation3 + $0x18] sm:$0xff]  ;;  %v120_v24 = vld [vmem:[#allocation9] sm:$0xf]  ;;  %s1785_s13 = sshll.u32 %s2997_s4, 4  ;;  %s1786_s13 = int_to_ptr.hbm [resolvable:$true] %s1785_s13 }
  0x41   :  { %689 = vmatpush.bf16.msrb.mxu2 %v2519_v7  ;;  %v122_v25 = vperm.slane %v120_v24, 0  ;;  %v123_v28 = vperm.slane %v120_v24, 1  ;;  %v2660_v39 = vperm.slane %v120_v24, 2  ;;  %v2662_v40 = vperm.slane %v120_v24, 3 }
  0x42   :  { %702 = vmatpush.bf16.msrb.mxu3 %v2523_v8 }
  0x43   :  { %664 = vmatpush.bf16.msrb.mxu0 %v2525_v9 }
  0x44   :  { %677 = vmatpush.bf16.msrb.mxu1 %v2528_v13 }
  0x45   :  { %690 = vmatpush.bf16.msrb.mxu2 %v2531_v20 }
  0x46   :  { %703 = vmatpush.bf16.msrb.mxu3 %v2535_v21  ;;  %327 = vmatmul.bf16.gmra.mxu0 %v2102_v19 }
  0x47   :  { %665 = vmatpush.bf16.msrb.mxu0 %v2537_v22  ;;  %356 = vmatmul.bf16.gmra.mxu1 %v2102_v19 }
  0x48   :  { %678 = vmatpush.bf16.msrb.mxu1 %v2540_v26  ;;  %385 = vmatmul.bf16.gmra.mxu2 %v2102_v19 }
  0x49   :  { %414 = vmatmul.bf16.gmra.mxu3 %v2102_v19  ;;  %691 = vmatpush.bf16.msrb.mxu2 %v2543_v32 }
  0x4a   :  { %704 = vmatpush.bf16.msrb.mxu3 %v2547_v33 }
  0x4b   :  { %666 = vmatpush.bf16.msrb.mxu0 %v2549_v34 }
  0x4c   :  { %679 = vmatpush.bf16.msrb.mxu1 %v2552_v35 }
  0x4d   :  { %692 = vmatpush.bf16.msrb.mxu2 %v2564_v52 }
  0x4e   :  { %705 = vmatpush.bf16.msrb.mxu3 %v2557_v43 }
  0x4f   :  { %667 = vmatpush.bf16.msrb.mxu0 %v2559_v44 }
  0x50   :  { %680 = vmatpush.bf16.msrb.mxu1 %v2562_v51 }
  0x51   :  { %693 = vmatpush.bf16.msrb.mxu2 %v2573_v4 }
  0x52   :  { %706 = vmatpush.bf16.msrb.mxu3 %v2569_v2 }
  0x53   :  { %668 = vmatpush.bf16.msrb.mxu0 %v2571_v3 }
  0x54   :  { %681 = vmatpush.bf16.msrb.mxu1 %v2576_v10 }
  0x55   :  { %694 = vmatpush.bf16.msrb.mxu2 %v2579_v14 }
  0x56   :  { %707 = vmatpush.bf16.msrb.mxu3 %v2583_v15  ;;  %332 = vmatmul.bf16.gmra.mxu0 %v2103_v16 }
  0x57   :  { %788 = vmatpush.bf16.msra.mxu0 %v2492_v37  ;;  %361 = vmatmul.bf16.gmra.mxu1 %v2103_v16 }
  0x58   :  { %801 = vmatpush.bf16.msra.mxu1 %v2494_v41  ;;  %390 = vmatmul.bf16.gmra.mxu2 %v2103_v16 }
  0x59   :  { %814 = vmatpush.bf16.msra.mxu2 %v2496_v47  ;;  %419 = vmatmul.bf16.gmra.mxu3 %v2103_v16 }
  0x5a   :  { %827 = vmatpush.bf16.msra.mxu3 %v2499_v48 }
  0x5b   :  { %789 = vmatpush.bf16.msra.mxu0 %v2501_v49 }
  0x5c   :  { %802 = vmatpush.bf16.msra.mxu1 %v2504_v53 }
  0x5d   :  { %815 = vmatpush.bf16.msra.mxu2 %v2507_v59 }
  0x5e   :  { %828 = vmatpush.bf16.msra.mxu3 %v2511_v60 }
  0x5f   :  { %790 = vmatpush.bf16.msra.mxu0 %v2513_v61 }
  0x60   :  { %803 = vmatpush.bf16.msra.mxu1 %v2516_v1 }
  0x61   :  { %816 = vmatpush.bf16.msra.mxu2 %v2519_v7 }
  0x62   :  { %829 = vmatpush.bf16.msra.mxu3 %v2523_v8 }
  0x63   :  { %791 = vmatpush.bf16.msra.mxu0 %v2525_v9 }
  0x64   :  { %804 = vmatpush.bf16.msra.mxu1 %v2528_v13 }
  0x65   :  { %817 = vmatpush.bf16.msra.mxu2 %v2531_v20 }
  0x66   :  { %830 = vmatpush.bf16.msra.mxu3 %v2535_v21  ;;  %337 = vmatmul.bf16.gmra.mxu0 %v2104_v17 }
  0x67   :  { %792 = vmatpush.bf16.msra.mxu0 %v2537_v22  ;;  %366 = vmatmul.bf16.gmra.mxu1 %v2104_v17 }
  0x68   :  { %805 = vmatpush.bf16.msra.mxu1 %v2540_v26  ;;  %395 = vmatmul.bf16.gmra.mxu2 %v2104_v17 }
  0x69   :  { %818 = vmatpush.bf16.msra.mxu2 %v2543_v32  ;;  %424 = vmatmul.bf16.gmra.mxu3 %v2104_v17 }
  0x6a   :  { %831 = vmatpush.bf16.msra.mxu3 %v2547_v33 }
  0x6b   :  { %793 = vmatpush.bf16.msra.mxu0 %v2549_v34 }
  0x6c   :  { %806 = vmatpush.bf16.msra.mxu1 %v2552_v35 }
  0x6d   :  { %819 = vmatpush.bf16.msra.mxu2 %v2564_v52 }
  0x6e   :  { %832 = vmatpush.bf16.msra.mxu3 %v2557_v43 }
  0x6f   :  { %794 = vmatpush.bf16.msra.mxu0 %v2559_v44 }
  0x70   :  { %807 = vmatpush.bf16.msra.mxu1 %v2562_v51 }
  0x71   :  { %820 = vmatpush.bf16.msra.mxu2 %v2573_v4 }
  0x72   :  { %833 = vmatpush.bf16.msra.mxu3 %v2569_v2 }
  0x73   :  { %795 = vmatpush.bf16.msra.mxu0 %v2571_v3 }
  0x74   :  { %808 = vmatpush.bf16.msra.mxu1 %v2576_v10 }
  0x75   :  { %821 = vmatpush.bf16.msra.mxu2 %v2579_v14 }
  0x76   :  { %834 = vmatpush.bf16.msra.mxu3 %v2583_v15  ;;  %669 = vmatmul.bf16.vlgmr.msrb.gmra.mxu0 %v2452_v18 }
  0x77   :  { %682 = vmatmul.bf16.vlgmr.msrb.gmra.mxu1 %v2452_v18  ;;  %916 = vmatpush.bf16.msrb.mxu0 %v2492_v37 }
  0x78   :  { %695 = vmatmul.bf16.vlgmr.msrb.gmra.mxu2 %v2452_v18  ;;  %929 = vmatpush.bf16.msrb.mxu1 %v2494_v41 }
  0x79   :  { %708 = vmatmul.bf16.vlgmr.msrb.gmra.mxu3 %v2452_v18  ;;  %942 = vmatpush.bf16.msrb.mxu2 %v2496_v47 }
  0x7a   :  { %955 = vmatpush.bf16.msrb.mxu3 %v2499_v48 }
  0x7b   :  { %917 = vmatpush.bf16.msrb.mxu0 %v2501_v49 }
  0x7c   :  { %930 = vmatpush.bf16.msrb.mxu1 %v2504_v53 }
  0x7d   :  { %943 = vmatpush.bf16.msrb.mxu2 %v2507_v59 }
  0x7e   :  { %956 = vmatpush.bf16.msrb.mxu3 %v2511_v60 }
  0x7f   :  { %918 = vmatpush.bf16.msrb.mxu0 %v2513_v61 }
  0x80   :  { %931 = vmatpush.bf16.msrb.mxu1 %v2516_v1 }
  0x81   :  { %944 = vmatpush.bf16.msrb.mxu2 %v2519_v7 }
  0x82   :  { %957 = vmatpush.bf16.msrb.mxu3 %v2523_v8 }
  0x83   :  { %919 = vmatpush.bf16.msrb.mxu0 %v2525_v9 }
  0x84   :  { %932 = vmatpush.bf16.msrb.mxu1 %v2528_v13 }
  0x85   :  { %945 = vmatpush.bf16.msrb.mxu2 %v2531_v20 }
  0x86   :  { %958 = vmatpush.bf16.msrb.mxu3 %v2535_v21 }
  0x87   :  { %920 = vmatpush.bf16.msrb.mxu0 %v2537_v22 }
  0x88   :  { %933 = vmatpush.bf16.msrb.mxu1 %v2540_v26 }
  0x89   :  { %946 = vmatpush.bf16.msrb.mxu2 %v2543_v32 }
  0x8a   :  { %959 = vmatpush.bf16.msrb.mxu3 %v2547_v33 }
  0x8b   :  { %921 = vmatpush.bf16.msrb.mxu0 %v2549_v34 }
  0x8c   :  { %934 = vmatpush.bf16.msrb.mxu1 %v2552_v35 }
  0x8d   :  { %947 = vmatpush.bf16.msrb.mxu2 %v2564_v52 }
  0x8e   :  { %960 = vmatpush.bf16.msrb.mxu3 %v2557_v43 }
  0x8f   :  { %922 = vmatpush.bf16.msrb.mxu0 %v2559_v44 }
  0x90   :  { %935 = vmatpush.bf16.msrb.mxu1 %v2562_v51 }
  0x91   :  { %948 = vmatpush.bf16.msrb.mxu2 %v2573_v4 }
  0x92   :  { %961 = vmatpush.bf16.msrb.mxu3 %v2569_v2 }
  0x93   :  { %923 = vmatpush.bf16.msrb.mxu0 %v2571_v3 }
  0x94   :  { %936 = vmatpush.bf16.msrb.mxu1 %v2576_v10 }
  0x95   :  { %949 = vmatpush.bf16.msrb.mxu2 %v2579_v14 }
  0x96   :  { %962 = vmatpush.bf16.msrb.mxu3 %v2583_v15 }
  0xb3   :  { %v323_v19 = vpop.f32.mrf.mxu0 }
  0xb4   :  { %v352_v23 = vpop.f32.mrf.mxu1 }
  0xbb   :  { %v2652_v27 = vpop.f32.mrf.mxu2  ;;  %v325_v30 = vpop.f32.mrf.mxu0 }
  0xbc   :  { %v2654_v29 = vpop.f32.mrf.mxu3  ;;  %v2656_v31 = vadd.f32 %v325_v30, %v122_v25  ;;  %v354_v36 = vpop.f32.mrf.mxu1 }
  0xbd   :  { %v2658_v38 = vadd.f32 %v354_v36, %v123_v28 }
  0xc3   :  { %v383_v42 = vpop.f32.mrf.mxu2  ;;  %v328_v50 = vpop.f32.mrf.mxu0 }
  0xc4   :  { %v2665_v45 = vadd.f32 %v383_v42, %v2660_v39  ;;  %v412_v46 = vpop.f32.mrf.mxu3  ;;  %v2670_v55 = vadd.f32 %v328_v50, %v122_v25  ;;  %v357_v56 = vpop.f32.mrf.mxu1 }
  0xc5   :  { %v2668_v54 = vadd.f32 %v412_v46, %v2662_v40  ;;  %v2672_v57 = vadd.f32 %v357_v56, %v123_v28 }
  0xcb   :  { %v386_v58 = vpop.f32.mrf.mxu2  ;;  %v330_v0 = vpop.f32.mrf.mxu0 }
  0xcc   :  { %v2675_v62 = vadd.f32 %v386_v58, %v2660_v39  ;;  %v415_v63 = vpop.f32.mrf.mxu3  ;;  %v2680_v6 = vadd.f32 %v330_v0, %v122_v25  ;;  %v359_v11 = vpop.f32.mrf.mxu1 }
  0xcd   :  { %v2678_v5 = vadd.f32 %v415_v63, %v2662_v40  ;;  %v2682_v12 = vadd.f32 %v359_v11, %v123_v28 }
  0xce   :  { %2998 = vst [vmem:[#allocation16_spill] sm:$0xff] %v2675_v62 }
  0xcf   :  { %2999 = vst [vmem:[#allocation17_spill] sm:$0xff] %v2680_v6 }
  0xd0   :  { %3000 = vst [vmem:[#allocation18_spill] sm:$0xff] %v2682_v12 }
  0xd3   :  { %v388_v16 = vpop.f32.mrf.mxu2  ;;  %v333_v24 = vpop.f32.mrf.mxu0 }
  0xd4   :  { %v2685_v17 = vadd.f32 %v388_v16, %v2660_v39  ;;  %v417_v18 = vpop.f32.mrf.mxu3  ;;  %v2690_v36 = vadd.f32 %v333_v24, %v122_v25  ;;  %v362_v42 = vpop.f32.mrf.mxu1 }
  0xd5   :  { %v2688_v30 = vadd.f32 %v417_v18, %v2662_v40  ;;  %v2692_v46 = vadd.f32 %v362_v42, %v123_v28 }
  0xd6   :  { %3001 = vst [vmem:[#allocation19_spill] sm:$0xff] %v2685_v17 }
  0xd7   :  { %3002 = vst [vmem:[#allocation20_spill] sm:$0xff] %v2688_v30 }
  0xd8   :  { %3003 = vst [vmem:[#allocation21_spill] sm:$0xff] %v2690_v36 }
  0xd9   :  { %3004 = vst [vmem:[#allocation22_spill] sm:$0xff] %v2692_v46 }
  0xdb   :  { %v391_v50 = vpop.f32.mrf.mxu2  ;;  %v335_v63 = vpop.f32.mrf.mxu0 }
  0xdc   :  { %v2695_v56 = vadd.f32 %v391_v50, %v2660_v39  ;;  %v420_v58 = vpop.f32.mrf.mxu3  ;;  %v2700_v11 = vadd.f32 %v335_v63, %v122_v25  ;;  %v364_v16 = vpop.f32.mrf.mxu1 }
  0xdd   :  { %v2698_v0 = vadd.f32 %v420_v58, %v2662_v40  ;;  %v2702_v17 = vadd.f32 %v364_v16, %v123_v28 }
  0xde   :  { %3005 = vst [vmem:[#allocation23_spill] sm:$0xff] %v2695_v56 }
  0xdf   :  { %3006 = vst [vmem:[#allocation24_spill] sm:$0xff] %v2698_v0 }
  0xe0   :  { %3007 = vst [vmem:[#allocation25_spill] sm:$0xff] %v2700_v11 }
  0xe1   :  { %3008 = vst [vmem:[#allocation26_spill] sm:$0xff] %v2702_v17 }
  0xe3   :  { %v393_v18 = vpop.f32.mrf.mxu2  ;;  %v338_v46 = vpop.f32.mrf.mxu0 }
  0xe4   :  { %v2705_v24 = vadd.f32 %v393_v18, %v2660_v39  ;;  %v422_v42 = vpop.f32.mrf.mxu3  ;;  %v2710_v50 = vadd.f32 %v338_v46, %v122_v25  ;;  %v367_v56 = vpop.f32.mrf.mxu1 }
  0xe5   :  { %v2708_v36 = vadd.f32 %v422_v42, %v2662_v40  ;;  %v2712_v30 = vadd.f32 %v367_v56, %v123_v28  ;;  %v324_v42 = vadd.f32 %v323_v19, %v122_v25  ;;  %v411_v19 = vadd.f32 %v2654_v29, %v2662_v40 }
  0xe6   :  { %3009 = vst [vmem:[#allocation27_spill] sm:$0xff] %v2705_v24 }
  0xe7   :  { %3010 = vst [vmem:[#allocation28_spill] sm:$0xff] %v2708_v36 }
  0xe8   :  { %3011 = vst [vmem:[#allocation29_spill] sm:$0xff] %v2710_v50  ;;  %v353_v50 = vadd.f32 %v352_v23, %v123_v28 }
  0xe9   :  { %3012 = vst [vmem:[#allocation30_spill] sm:$0xff] %v2712_v30 }
  0xeb   :  { %v396_v58 = vpop.f32.mrf.mxu2  ;;  %v340_v17 = vpop.f32.mrf.mxu0 }
  0xec   :  { %v2715_v63 = vadd.f32 %v396_v58, %v2660_v39  ;;  %v425_v16 = vpop.f32.mrf.mxu3  ;;  %v2720_v18 = vadd.f32 %v340_v17, %v122_v25  ;;  %v369_v24 = vpop.f32.mrf.mxu1 }
  0xed   :  { %v2718_v11 = vadd.f32 %v425_v16, %v2662_v40  ;;  %v2722_v0 = vadd.f32 %v369_v24, %v123_v28 }
  0xee   :  { %3013 = vst [vmem:[#allocation31_spill] sm:$0xff] %v2715_v63 }
  0xef   :  { %3014 = vst [vmem:[#allocation32_spill] sm:$0xff] %v2718_v11 }
  0xf0   :  { %3015 = vst [vmem:[#allocation33_spill] sm:$0xff] %v2720_v18 }
  0xf1   :  { %3016 = vst [vmem:[#allocation34_spill] sm:$0xff] %v2722_v0 }
  0xf3   :  { %v398_v46 = vpop.f32.mrf.mxu2  ;;  %v670_v36 = vpop.f32.mrf.mxu0 }
  0xf4   :  { %v2725_v56 = vadd.f32 %v398_v46, %v2660_v39  ;;  %v427_v30 = vpop.f32.mrf.mxu3  ;;  %v713_v63 = vadd.f32 %v670_v36, %v324_v42  ;;  %v683_v12 = vpop.f32.mrf.mxu1 }
  0xf5   :  { %v2728_v58 = vadd.f32 %v427_v30, %v2662_v40  ;;  %v714_v16 = vadd.f32 %v683_v12, %v353_v50 }
  0xf6   :  { %3017 = vst [vmem:[#allocation35_spill] sm:$0xff] %v2725_v56  ;;  %v2076_v11 = vmul.f32 -1.442695, %v713_v63 }
  0xf7   :  { %3018 = vst [vmem:[#allocation36_spill] sm:$0xff] %v2728_v58  ;;  %v2077_v17 = vmul.f32 -1.442695, %v714_v16 }
  0xf8   :  { %2180 = vpow2.f32 %v2076_v11  ;;  %v382_v11 = vadd.f32 %v2652_v27, %v2660_v39 }
  0xf9   :  { %2182 = vpow2.f32 %v2077_v17 }
  0xfb   :  { %v696_v25 = vpop.f32.mrf.mxu2  ;;  %v672_v28 = vpop.f32.mrf.mxu0 }
  0xfc   :  { %v709_v23 = vpop.f32.mrf.mxu3  ;;  %v685_v46 = vpop.f32.mrf.mxu1  ;;  %v715_v40 = vadd.f32 %v696_v25, %v382_v11 }
  0xfd   :  { %v716_v24 = vadd.f32 %v709_v23, %v411_v19 }
  0xfe   :  { %v2181_v56 = vpop.eup %2180 }
  0xff   :  { %v2078_v0 = vmul.f32 -1.442695, %v716_v24  ;;  %v2183_v18 = vpop.eup %2182  ;;  %v720_v30 = vadd.f32 1.0, %v2181_v56 }
 0x100   :  { %v739_v58 = vadd.f32 1.0, %v2183_v18 }
 0x101   :  { %2184 = vpow2.f32 %v2078_v0  ;;  %v732_v56 = vand.u32 2147483648, %v720_v30  ;;  %v730_v28 = vand.u32 2147483647, %v720_v30  ;;  %vm726_vm2 = vweird.f32 %v720_v30 }
 0x102   :  { %2186 = vrcp.f32 %v720_v30  ;;  %v751_v0 = vand.u32 2147483648, %v739_v58  ;;  %v749_v46 = vand.u32 2147483647, %v739_v58  ;;  %vm745_vm3 = vweird.f32 %v739_v58 }
 0x103   :  { %2188 = vrcp.f32 %v739_v58  ;;  %v698_v12 = vpop.f32.mrf.mxu2  ;;  %v733_v25 = vor.u32 1.1754944e-38, %v732_v56  ;;  %vm731_vm5 = vcmp.eq.f32.partialorder %v730_v28, 8.507059e+37 }
 0x104   :  { %v711_v36 = vpop.f32.mrf.mxu3  ;;  %vm750_vm7 = vcmp.eq.f32.partialorder %v749_v46, 8.507059e+37 }
 0x105   :  { %v752_v36 = vor.u32 1.1754944e-38, %v751_v0 }
 0x107   :  { %v2185_v50 = vpop.eup %2184 }
 0x108   :  { %v2187_v29 = vpop.eup %2186  ;;  %v759_v63 = vadd.f32 1.0, %v2185_v50 }
 0x109   :  { %v2189_v42 = vpop.eup %2188  ;;  %v722_v16 = vmul.f32 %v2187_v29, %v720_v30  ;;  %vm727_vm0 = vweird.f32 %v2187_v29 }
 0x10a   :  { %v741_v17 = vmul.f32 %v2189_v42, %v739_v58  ;;  %2190 = vrcp.f32 %v759_v63  ;;  %vm746_vm1 = vweird.f32 %v2189_v42  ;;  %vm728_vm4 = vmor %vm726_vm2, %vm727_vm0  ;;  %v771_v56 = vand.u32 2147483648, %v759_v63 }
 0x10b   :  { %v723_v19 = vsub.f32 1.0, %v722_v16  ;;  %2192 = vtanh.f32 %v715_v40  ;;  %vm747_vm6 = vmor %vm745_vm3, %vm746_vm1  ;;  %vm765_vm9 = vweird.f32 %v759_v63 }
 0x10c   :  { %v742_v23 = vsub.f32 1.0, %v741_v17  ;;  %v772_v28 = vor.u32 1.1754944e-38, %v771_v56 }
 0x10d   :  { %v724_v18 = vmul.f32 %v2187_v29, %v723_v19 }
 0x10e   :  { %v743_v24 = vmul.f32 %v2189_v42, %v742_v23 }
 0x10f   :  { %v725_v27 = vadd.f32 %v2187_v29, %v724_v18 }
 0x110   :  { %v2191_v39 = vpop.eup %2190  ;;  %v744_v12 = vadd.f32 %v2189_v42, %v743_v24 }
 0x111   :  { %v729_v11 = vsel %vm728_vm4, %v2187_v29, %v725_v27  ;;  %v761_v50 = vmul.f32 %v2191_v39, %v759_v63  ;;  %v2193_v40 = vpop.eup %2192  ;;  %vm766_vm8 = vweird.f32 %v2191_v39  ;;  %v769_v29 = vand.u32 2147483647, %v759_v63 }
 0x112   :  { %v734_v16 = vsel %vm731_vm5, %v733_v25, %v729_v11  ;;  %v748_v17 = vsel %vm747_vm6, %v2189_v42, %v744_v12  ;;  %vm767_vm10 = vmor %vm765_vm9, %vm766_vm8 }
 0x113   :  { %v753_v19 = vsel %vm750_vm7, %v752_v36, %v748_v17  ;;  %v776_v23 = vmul.f32 %v2193_v40, %v734_v16  ;;  %v762_v6 = vsub.f32 1.0, %v761_v50  ;;  %vm770_vm11 = vcmp.eq.f32.partialorder %v769_v29, 8.507059e+37 }
 0x114   :  { %v775_v62 = vmul.f32 0.0, %v753_v19 }
 0x115   :  { %v763_v18 = vmul.f32 %v2191_v39, %v762_v6 }
 0x116   :  { %v2734_v30 = vadd.f32 %v776_v23, %v775_v62 }
 0x117   :  { %v764_v58 = vadd.f32 %v2191_v39, %v763_v18 }
 0x118   :  { %2194 = vtanh.f32 %v2734_v30 }
 0x119   :  { %v768_v0 = vsel %vm767_vm10, %v2191_v39, %v764_v58 }
 0x11a   :  { %v773_v24 = vsel %vm770_vm11, %v772_v28, %v768_v0 }
 0x11e   :  { %v2195_v42 = vpop.eup %2194 }
 0x11f   :  { %v2737_v46 = vmul.f32 %v2195_v42, %v773_v24 }
 0x121   :  { %v787_v6 = vpack.c.bf16 %v2737_v46, %v2737_v46 }
 0x123   :  { %796 = vmatmul.bf16.vlgmr.msra.gmra.mxu0 %v787_v6  ;;  %809 = vmatmul.bf16.vlgmr.msra.gmra.mxu1 %v787_v6 }
 0x124   :  { %822 = vmatmul.bf16.vlgmr.msra.gmra.mxu2 %v787_v6  ;;  %835 = vmatmul.bf16.vlgmr.msra.gmra.mxu3 %v787_v6 }
 0x125   :  { %1044 = vmatpush.bf16.msra.mxu0 %v2492_v37  ;;  %1057 = vmatpush.bf16.msra.mxu1 %v2494_v41 }
 0x126   :  { %1070 = vmatpush.bf16.msra.mxu2 %v2496_v47  ;;  %1083 = vmatpush.bf16.msra.mxu3 %v2499_v48 }
 0x129   :  { %1045 = vmatpush.bf16.msra.mxu0 %v2501_v49  ;;  %1058 = vmatpush.bf16.msra.mxu1 %v2504_v53 }
 0x12a   :  { %1071 = vmatpush.bf16.msra.mxu2 %v2507_v59  ;;  %1084 = vmatpush.bf16.msra.mxu3 %v2511_v60 }
 0x12d   :  { %1046 = vmatpush.bf16.msra.mxu0 %v2513_v61  ;;  %1059 = vmatpush.bf16.msra.mxu1 %v2516_v1 }
 0x12e   :  { %1072 = vmatpush.bf16.msra.mxu2 %v2519_v7  ;;  %1085 = vmatpush.bf16.msra.mxu3 %v2523_v8 }
 0x131   :  { %1047 = vmatpush.bf16.msra.mxu0 %v2525_v9  ;;  %1060 = vmatpush.bf16.msra.mxu1 %v2528_v13 }
 0x132   :  { %1073 = vmatpush.bf16.msra.mxu2 %v2531_v20  ;;  %1086 = vmatpush.bf16.msra.mxu3 %v2535_v21 }
 0x135   :  { %1048 = vmatpush.bf16.msra.mxu0 %v2537_v22  ;;  %1061 = vmatpush.bf16.msra.mxu1 %v2540_v26 }
 0x136   :  { %1074 = vmatpush.bf16.msra.mxu2 %v2543_v32  ;;  %1087 = vmatpush.bf16.msra.mxu3 %v2547_v33 }
 0x139   :  { %1049 = vmatpush.bf16.msra.mxu0 %v2549_v34  ;;  %1062 = vmatpush.bf16.msra.mxu1 %v2552_v35 }
 0x13a   :  { %1075 = vmatpush.bf16.msra.mxu2 %v2564_v52  ;;  %1088 = vmatpush.bf16.msra.mxu3 %v2557_v43 }
 0x13d   :  { %1050 = vmatpush.bf16.msra.mxu0 %v2559_v44  ;;  %1063 = vmatpush.bf16.msra.mxu1 %v2562_v51 }
 0x13e   :  { %1076 = vmatpush.bf16.msra.mxu2 %v2573_v4  ;;  %1089 = vmatpush.bf16.msra.mxu3 %v2569_v2 }
 0x141   :  { %1051 = vmatpush.bf16.msra.mxu0 %v2571_v3  ;;  %1064 = vmatpush.bf16.msra.mxu1 %v2576_v10 }
 0x142   :  { %1077 = vmatpush.bf16.msra.mxu2 %v2579_v14  ;;  %1090 = vmatpush.bf16.msra.mxu3 %v2583_v15 }
 0x1a0   :  { %v797_v62 = vpop.f32.mrf.mxu0  ;;  %v810_v63 = vpop.f32.mrf.mxu1 }
 0x1a1   :  { %v840_v27 = vadd.f32 %v797_v62, %v2656_v31  ;;  %v841_v39 = vadd.f32 %v810_v63, %v2658_v38 }
 0x1a3   :  { %v2079_v25 = vmul.f32 -1.442695, %v840_v27  ;;  %v2080_v12 = vmul.f32 -1.442695, %v841_v39 }
 0x1a5   :  { %2196 = vpow2.f32 %v2079_v25 }
 0x1a6   :  { %2198 = vpow2.f32 %v2080_v12 }
 0x1a7   :  { %v823_v36 = vpop.f32.mrf.mxu2  ;;  %v836_v11 = vpop.f32.mrf.mxu3 }
 0x1a8   :  { %v843_v50 = vadd.f32 %v836_v11, %v2668_v54  ;;  %v799_v40 = vpop.f32.mrf.mxu0  ;;  %v812_v16 = vpop.f32.mrf.mxu1  ;;  %v842_v28 = vadd.f32 %v823_v36, %v2665_v45 }
 0x1aa   :  { %v2081_v17 = vmul.f32 -1.442695, %v843_v50 }
 0x1ab   :  { %v2197_v19 = vpop.eup %2196 }
 0x1ac   :  { %v2199_v23 = vpop.eup %2198  ;;  %v847_v18 = vadd.f32 1.0, %v2197_v19  ;;  %2200 = vpow2.f32 %v2081_v17 }
 0x1ad   :  { %v866_v58 = vadd.f32 1.0, %v2199_v23 }
 0x1ae   :  { %2202 = vrcp.f32 %v847_v18  ;;  %v859_v63 = vand.u32 2147483648, %v847_v18  ;;  %v857_v25 = vand.u32 2147483647, %v847_v18  ;;  %vm853_vm14 = vweird.f32 %v847_v18 }
 0x1af   :  { %2204 = vrcp.f32 %v866_v58  ;;  %v825_v31 = vpop.f32.mrf.mxu2  ;;  %v838_v38 = vpop.f32.mrf.mxu3  ;;  %v878_v27 = vand.u32 2147483648, %v866_v58  ;;  %v876_v11 = vand.u32 2147483647, %v866_v58  ;;  %vm872_vm15 = vweird.f32 %v866_v58 }
 0x1b0   :  { %v860_v45 = vor.u32 1.1754944e-38, %v859_v63  ;;  %vm858_vm2 = vcmp.eq.f32.partialorder %v857_v25, 8.507059e+37 }
 0x1b1   :  { %v879_v17 = vor.u32 1.1754944e-38, %v878_v27  ;;  %vm877_vm3 = vcmp.eq.f32.partialorder %v876_v11, 8.507059e+37 }
 0x1b2   :  { %v2201_v56 = vpop.eup %2200 }
 0x1b3   :  { %v886_v29 = vadd.f32 1.0, %v2201_v56 }
 0x1b4   :  { %v2203_v0 = vpop.eup %2202 }
 0x1b5   :  { %v2205_v42 = vpop.eup %2204  ;;  %v849_v24 = vmul.f32 %v2203_v0, %v847_v18  ;;  %2206 = vrcp.f32 %v886_v29  ;;  %vm854_vm12 = vweird.f32 %v2203_v0  ;;  %vm892_vm5 = vweird.f32 %v886_v29 }
 0x1b6   :  { %v868_v54 = vmul.f32 %v2205_v42, %v866_v58  ;;  %2208 = vtanh.f32 %v842_v28  ;;  %vm873_vm13 = vweird.f32 %v2205_v42  ;;  %vm855_vm0 = vmor %vm853_vm14, %vm854_vm12 }
 0x1b7   :  { %v850_v6 = vsub.f32 1.0, %v849_v24  ;;  %vm874_vm1 = vmor %vm872_vm15, %vm873_vm13 }
 0x1b8   :  { %v869_v62 = vsub.f32 1.0, %v868_v54 }
 0x1b9   :  { %v851_v39 = vmul.f32 %v2203_v0, %v850_v6 }
 0x1ba   :  { %v870_v12 = vmul.f32 %v2205_v42, %v869_v62  ;;  %v898_v62 = vand.u32 2147483648, %v886_v29 }
 0x1bb   :  { %v2207_v50 = vpop.eup %2206  ;;  %v852_v40 = vadd.f32 %v2203_v0, %v851_v39 }
 0x1bc   :  { %v871_v36 = vadd.f32 %v2205_v42, %v870_v12  ;;  %v888_v16 = vmul.f32 %v2207_v50, %v886_v29  ;;  %v2209_v23 = vpop.eup %2208  ;;  %vm893_vm4 = vweird.f32 %v2207_v50  ;;  %v899_v27 = vor.u32 1.1754944e-38, %v898_v62  ;;  %v3019_v62 = vld [vmem:[#allocation16_spill] sm:$0xff] }
 0x1bd   :  { %v856_v19 = vsel %vm855_vm0, %v2203_v0, %v852_v40  ;;  %v896_v0 = vand.u32 2147483647, %v886_v29  ;;  %vm894_vm6 = vmor %vm892_vm5, %vm893_vm4 }
 0x1be   :  { %v861_v31 = vsel %vm858_vm2, %v860_v45, %v856_v19  ;;  %v875_v38 = vsel %vm874_vm1, %v2205_v42, %v871_v36  ;;  %v889_v56 = vsub.f32 1.0, %v888_v16 }
 0x1bf   :  { %v880_v28 = vsel %vm877_vm3, %v879_v17, %v875_v38  ;;  %v903_v24 = vmul.f32 %v2209_v23, %v861_v31  ;;  %vm897_vm7 = vcmp.eq.f32.partialorder %v896_v0, 8.507059e+37 }
 0x1c0   :  { %v902_v54 = vmul.f32 %v880_v28, %v2734_v30  ;;  %v890_v6 = vmul.f32 %v2207_v50, %v889_v56 }
 0x1c2   :  { %v2778_v18 = vadd.f32 %v903_v24, %v902_v54  ;;  %v891_v58 = vadd.f32 %v2207_v50, %v890_v6 }
 0x1c4   :  { %2210 = vtanh.f32 %v2778_v18  ;;  %v895_v63 = vsel %vm894_vm6, %v2207_v50, %v891_v58 }
 0x1c5   :  { %v900_v39 = vsel %vm897_vm7, %v899_v27, %v895_v63 }
 0x1ca   :  { %v2211_v42 = vpop.eup %2210 }
 0x1cb   :  { %v2781_v25 = vmul.f32 %v2211_v42, %v900_v39 }
 0x1cd   :  { %v915_v30 = vpack.c.bf16 %v2781_v25, %v2781_v25 }
 0x1cf   :  { %924 = vmatmul.bf16.vlgmr.msrb.gmra.mxu0 %v915_v30  ;;  %937 = vmatmul.bf16.vlgmr.msrb.gmra.mxu1 %v915_v30 }
 0x1d0   :  { %950 = vmatmul.bf16.vlgmr.msrb.gmra.mxu2 %v915_v30  ;;  %963 = vmatmul.bf16.vlgmr.msrb.gmra.mxu3 %v915_v30 }
 0x1d1   :  { %1172 = vmatpush.bf16.msrb.mxu0 %v2492_v37  ;;  %1185 = vmatpush.bf16.msrb.mxu1 %v2494_v41 }
 0x1d2   :  { %1198 = vmatpush.bf16.msrb.mxu2 %v2496_v47  ;;  %1211 = vmatpush.bf16.msrb.mxu3 %v2499_v48 }
 0x1d5   :  { %1173 = vmatpush.bf16.msrb.mxu0 %v2501_v49  ;;  %1186 = vmatpush.bf16.msrb.mxu1 %v2504_v53 }
 0x1d6   :  { %1199 = vmatpush.bf16.msrb.mxu2 %v2507_v59  ;;  %1212 = vmatpush.bf16.msrb.mxu3 %v2511_v60 }
 0x1d9   :  { %1174 = vmatpush.bf16.msrb.mxu0 %v2513_v61  ;;  %1187 = vmatpush.bf16.msrb.mxu1 %v2516_v1 }
 0x1da   :  { %1200 = vmatpush.bf16.msrb.mxu2 %v2519_v7  ;;  %1213 = vmatpush.bf16.msrb.mxu3 %v2523_v8 }
 0x1dd   :  { %1175 = vmatpush.bf16.msrb.mxu0 %v2525_v9  ;;  %1188 = vmatpush.bf16.msrb.mxu1 %v2528_v13 }
 0x1de   :  { %1201 = vmatpush.bf16.msrb.mxu2 %v2531_v20  ;;  %1214 = vmatpush.bf16.msrb.mxu3 %v2535_v21 }
 0x1e1   :  { %1176 = vmatpush.bf16.msrb.mxu0 %v2537_v22  ;;  %1189 = vmatpush.bf16.msrb.mxu1 %v2540_v26 }
 0x1e2   :  { %1202 = vmatpush.bf16.msrb.mxu2 %v2543_v32  ;;  %1215 = vmatpush.bf16.msrb.mxu3 %v2547_v33 }
 0x1e5   :  { %1177 = vmatpush.bf16.msrb.mxu0 %v2549_v34  ;;  %1190 = vmatpush.bf16.msrb.mxu1 %v2552_v35 }
 0x1e6   :  { %1203 = vmatpush.bf16.msrb.mxu2 %v2564_v52  ;;  %1216 = vmatpush.bf16.msrb.mxu3 %v2557_v43 }
 0x1e9   :  { %1178 = vmatpush.bf16.msrb.mxu0 %v2559_v44  ;;  %1191 = vmatpush.bf16.msrb.mxu1 %v2562_v51 }
 0x1ea   :  { %1204 = vmatpush.bf16.msrb.mxu2 %v2573_v4  ;;  %1217 = vmatpush.bf16.msrb.mxu3 %v2569_v2 }
 0x1ed   :  { %1179 = vmatpush.bf16.msrb.mxu0 %v2571_v3  ;;  %1192 = vmatpush.bf16.msrb.mxu1 %v2576_v10 }
 0x1ee   :  { %1205 = vmatpush.bf16.msrb.mxu2 %v2579_v14  ;;  %1218 = vmatpush.bf16.msrb.mxu3 %v2583_v15 }
 0x24c   :  { %v925_v29 = vpop.f32.mrf.mxu0  ;;  %v938_v12 = vpop.f32.mrf.mxu1 }
 0x24d   :  { %v968_v11 = vadd.f32 %v925_v29, %v2670_v55  ;;  %v969_v50 = vadd.f32 %v938_v12, %v2672_v57 }
 0x24f   :  { %v2082_v40 = vmul.f32 -1.442695, %v968_v11  ;;  %v2083_v45 = vmul.f32 -1.442695, %v969_v50 }
 0x251   :  { %2212 = vpow2.f32 %v2082_v40 }
 0x252   :  { %2214 = vpow2.f32 %v2083_v45 }
 0x253   :  { %v951_v36 = vpop.f32.mrf.mxu2  ;;  %v964_v16 = vpop.f32.mrf.mxu3 }
 0x254   :  { %v971_v17 = vadd.f32 %v964_v16, %v2678_v5  ;;  %v927_v19 = vpop.f32.mrf.mxu0  ;;  %v940_v23 = vpop.f32.mrf.mxu1  ;;  %v970_v0 = vadd.f32 %v951_v36, %v3019_v62 }
 0x256   :  { %v2084_v31 = vmul.f32 -1.442695, %v971_v17 }
 0x257   :  { %v2213_v38 = vpop.eup %2212 }
 0x258   :  { %v2215_v56 = vpop.eup %2214  ;;  %v975_v28 = vadd.f32 1.0, %v2213_v38  ;;  %2216 = vpow2.f32 %v2084_v31 }
 0x259   :  { %v994_v24 = vadd.f32 1.0, %v2215_v56 }
 0x25a   :  { %2218 = vrcp.f32 %v975_v28  ;;  %v987_v30 = vand.u32 2147483648, %v975_v28  ;;  %v985_v11 = vand.u32 2147483647, %v975_v28  ;;  %vm981_vm10 = vweird.f32 %v975_v28 }
 0x25b   :  { %2220 = vrcp.f32 %v994_v24  ;;  %v953_v55 = vpop.f32.mrf.mxu2  ;;  %v966_v57 = vpop.f32.mrf.mxu3  ;;  %v1006_v29 = vand.u32 2147483648, %v994_v24  ;;  %v1004_v40 = vand.u32 2147483647, %v994_v24  ;;  %vm1000_vm11 = vweird.f32 %v994_v24 }
 0x25c   :  { %v988_v36 = vor.u32 1.1754944e-38, %v987_v30  ;;  %vm986_vm14 = vcmp.eq.f32.partialorder %v985_v11, 8.507059e+37 }
 0x25d   :  { %v1007_v23 = vor.u32 1.1754944e-38, %v1006_v29  ;;  %vm1005_vm15 = vcmp.eq.f32.partialorder %v1004_v40, 8.507059e+37  ;;  %v907_v29 = vmax.f32 %v2737_v46, %v2781_v25  ;;  %v3021_v40 = vld [vmem:[#allocation18_spill] sm:$0xff] }
 0x25e   :  { %v2217_v54 = vpop.eup %2216 }
 0x25f   :  { %v1014_v6 = vadd.f32 1.0, %v2217_v54 }
 0x260   :  { %v2219_v58 = vpop.eup %2218 }
 0x261   :  { %v2221_v63 = vpop.eup %2220  ;;  %v977_v27 = vmul.f32 %v2219_v58, %v975_v28  ;;  %2222 = vrcp.f32 %v1014_v6  ;;  %vm982_vm8 = vweird.f32 %v2219_v58  ;;  %vm1020_vm1 = vweird.f32 %v1014_v6 }
 0x262   :  { %v996_v5 = vmul.f32 %v2221_v63, %v994_v24  ;;  %2224 = vtanh.f32 %v970_v0  ;;  %vm1001_vm9 = vweird.f32 %v2221_v63  ;;  %vm983_vm12 = vmor %vm981_vm10, %vm982_vm8 }
 0x263   :  { %v978_v42 = vsub.f32 1.0, %v977_v27  ;;  %vm1002_vm13 = vmor %vm1000_vm11, %vm1001_vm9 }
 0x264   :  { %v997_v39 = vsub.f32 1.0, %v996_v5  ;;  %v1026_v5 = vand.u32 2147483648, %v1014_v6 }
 0x265   :  { %v979_v12 = vmul.f32 %v2219_v58, %v978_v42 }
 0x266   :  { %v998_v50 = vmul.f32 %v2221_v63, %v997_v39  ;;  %v1027_v39 = vor.u32 1.1754944e-38, %v1026_v5 }
 0x267   :  { %v2223_v45 = vpop.eup %2222  ;;  %v980_v16 = vadd.f32 %v2219_v58, %v979_v12 }
 0x268   :  { %v999_v17 = vadd.f32 %v2221_v63, %v998_v50  ;;  %v1016_v19 = vmul.f32 %v2223_v45, %v1014_v6  ;;  %v2225_v38 = vpop.eup %2224  ;;  %vm1021_vm0 = vweird.f32 %v2223_v45 }
 0x269   :  { %v984_v31 = vsel %vm983_vm12, %v2219_v58, %v980_v16  ;;  %v1024_v58 = vand.u32 2147483647, %v1014_v6  ;;  %vm1022_vm2 = vmor %vm1020_vm1, %vm1021_vm0  ;;  %v3020_v6 = vld [vmem:[#allocation17_spill] sm:$0xff] }
 0x26a   :  { %v989_v56 = vsel %vm986_vm14, %v988_v36, %v984_v31  ;;  %v1003_v55 = vsel %vm1002_vm13, %v2221_v63, %v999_v17  ;;  %v1017_v57 = vsub.f32 1.0, %v1016_v19 }
 0x26b   :  { %v1008_v54 = vsel %vm1005_vm15, %v1007_v23, %v1003_v55  ;;  %v1031_v62 = vmul.f32 %v2225_v38, %v989_v56  ;;  %vm1025_vm3 = vcmp.eq.f32.partialorder %v1024_v58, 8.507059e+37  ;;  %v3022_v23 = vld [vmem:[#allocation20_spill] sm:$0xff] }
 0x26c   :  { %v1030_v0 = vmul.f32 %v1008_v54, %v2778_v18  ;;  %v1018_v27 = vmul.f32 %v2223_v45, %v1017_v57 }
 0x26e   :  { %v2822_v28 = vadd.f32 %v1031_v62, %v1030_v0  ;;  %v1019_v24 = vadd.f32 %v2223_v45, %v1018_v27 }
 0x270   :  { %2226 = vtanh.f32 %v2822_v28  ;;  %v1023_v42 = vsel %vm1022_vm2, %v2223_v45, %v1019_v24 }
 0x271   :  { %v1028_v30 = vsel %vm1025_vm3, %v1027_v39, %v1023_v42  ;;  %v3023_v39 = vld [vmem:[#allocation19_spill] sm:$0xff] }
 0x276   :  { %v2227_v63 = vpop.eup %2226 }
 0x277   :  { %v1034_v18 = vmul.f32 %v2227_v63, %v1028_v30 }
 0x279   :  { %v2827_v12 = vmax.f32 %v907_v29, %v1034_v18  ;;  %v1043_v11 = vpack.c.bf16 %v1034_v18, %v1034_v18 }
 0x27b   :  { %1052 = vmatmul.bf16.vlgmr.msra.gmra.mxu0 %v1043_v11  ;;  %1065 = vmatmul.bf16.vlgmr.msra.gmra.mxu1 %v1043_v11 }
 0x27c   :  { %1078 = vmatmul.bf16.vlgmr.msra.gmra.mxu2 %v1043_v11  ;;  %1091 = vmatmul.bf16.vlgmr.msra.gmra.mxu3 %v1043_v11 }
 0x27d   :  { %1300 = vmatpush.bf16.msra.mxu0 %v2492_v37  ;;  %1313 = vmatpush.bf16.msra.mxu1 %v2494_v41 }
 0x27e   :  { %1326 = vmatpush.bf16.msra.mxu2 %v2496_v47  ;;  %1339 = vmatpush.bf16.msra.mxu3 %v2499_v48 }
 0x281   :  { %1301 = vmatpush.bf16.msra.mxu0 %v2501_v49  ;;  %1314 = vmatpush.bf16.msra.mxu1 %v2504_v53 }
 0x282   :  { %1327 = vmatpush.bf16.msra.mxu2 %v2507_v59  ;;  %1340 = vmatpush.bf16.msra.mxu3 %v2511_v60 }
 0x285   :  { %1302 = vmatpush.bf16.msra.mxu0 %v2513_v61  ;;  %1315 = vmatpush.bf16.msra.mxu1 %v2516_v1 }
 0x286   :  { %1328 = vmatpush.bf16.msra.mxu2 %v2519_v7  ;;  %1341 = vmatpush.bf16.msra.mxu3 %v2523_v8 }
 0x289   :  { %1303 = vmatpush.bf16.msra.mxu0 %v2525_v9  ;;  %1316 = vmatpush.bf16.msra.mxu1 %v2528_v13 }
 0x28a   :  { %1329 = vmatpush.bf16.msra.mxu2 %v2531_v20  ;;  %1342 = vmatpush.bf16.msra.mxu3 %v2535_v21 }
 0x28d   :  { %1304 = vmatpush.bf16.msra.mxu0 %v2537_v22  ;;  %1317 = vmatpush.bf16.msra.mxu1 %v2540_v26 }
 0x28e   :  { %1330 = vmatpush.bf16.msra.mxu2 %v2543_v32  ;;  %1343 = vmatpush.bf16.msra.mxu3 %v2547_v33 }
 0x291   :  { %1305 = vmatpush.bf16.msra.mxu0 %v2549_v34  ;;  %1318 = vmatpush.bf16.msra.mxu1 %v2552_v35 }
 0x292   :  { %1331 = vmatpush.bf16.msra.mxu2 %v2564_v52  ;;  %1344 = vmatpush.bf16.msra.mxu3 %v2557_v43 }
 0x295   :  { %1306 = vmatpush.bf16.msra.mxu0 %v2559_v44  ;;  %1319 = vmatpush.bf16.msra.mxu1 %v2562_v51 }
 0x296   :  { %1332 = vmatpush.bf16.msra.mxu2 %v2573_v4  ;;  %1345 = vmatpush.bf16.msra.mxu3 %v2569_v2 }
 0x299   :  { %1307 = vmatpush.bf16.msra.mxu0 %v2571_v3  ;;  %1320 = vmatpush.bf16.msra.mxu1 %v2576_v10 }
 0x29a   :  { %1333 = vmatpush.bf16.msra.mxu2 %v2579_v14  ;;  %1346 = vmatpush.bf16.msra.mxu3 %v2583_v15 }
 0x2f8   :  { %v1053_v46 = vpop.f32.mrf.mxu0  ;;  %v1066_v25 = vpop.f32.mrf.mxu1 }
 0x2f9   :  { %v1096_v50 = vadd.f32 %v1053_v46, %v3020_v6  ;;  %v1097_v45 = vadd.f32 %v1066_v25, %v3021_v40 }
 0x2fb   :  { %v2085_v16 = vmul.f32 -1.442695, %v1096_v50  ;;  %v2086_v36 = vmul.f32 -1.442695, %v1097_v45 }
 0x2fd   :  { %2228 = vpow2.f32 %v2085_v16 }
 0x2fe   :  { %2230 = vpow2.f32 %v2086_v36 }
 0x2ff   :  { %v1079_v17 = vpop.f32.mrf.mxu2  ;;  %v1092_v19 = vpop.f32.mrf.mxu3 }
 0x300   :  { %v1099_v31 = vadd.f32 %v1092_v19, %v3022_v23  ;;  %v1055_v38 = vpop.f32.mrf.mxu0  ;;  %v1068_v56 = vpop.f32.mrf.mxu1  ;;  %v1098_v63 = vadd.f32 %v1079_v17, %v3023_v39 }
 0x302   :  { %v2087_v55 = vmul.f32 -1.442695, %v1099_v31 }
 0x303   :  { %v2229_v57 = vpop.eup %2228 }
 0x304   :  { %v2231_v54 = vpop.eup %2230  ;;  %v1103_v62 = vadd.f32 1.0, %v2229_v57  ;;  %2232 = vpow2.f32 %v2087_v55 }
 0x305   :  { %v1122_v0 = vadd.f32 1.0, %v2231_v54 }
 0x306   :  { %2234 = vrcp.f32 %v1103_v62  ;;  %v1115_v25 = vand.u32 2147483648, %v1103_v62  ;;  %v1113_v40 = vand.u32 2147483647, %v1103_v62  ;;  %vm1109_vm6 = vweird.f32 %v1103_v62 }
 0x307   :  { %2236 = vrcp.f32 %v1122_v0  ;;  %v1081_v27 = vpop.f32.mrf.mxu2  ;;  %v1094_v24 = vpop.f32.mrf.mxu3  ;;  %v1134_v6 = vand.u32 2147483648, %v1122_v0  ;;  %v1132_v16 = vand.u32 2147483647, %v1122_v0  ;;  %vm1128_vm7 = vweird.f32 %v1122_v0 }
 0x308   :  { %v1116_v17 = vor.u32 1.1754944e-38, %v1115_v25  ;;  %vm1114_vm10 = vcmp.eq.f32.partialorder %v1113_v40, 8.507059e+37  ;;  %v3024_v40 = vld [vmem:[#allocation21_spill] sm:$0xff] }
 0x309   :  { %v1135_v38 = vor.u32 1.1754944e-38, %v1134_v6  ;;  %vm1133_vm11 = vcmp.eq.f32.partialorder %v1132_v16, 8.507059e+37  ;;  %v3025_v16 = vld [vmem:[#allocation22_spill] sm:$0xff] }
 0x30a   :  { %v2233_v5 = vpop.eup %2232 }
 0x30b   :  { %v1142_v58 = vadd.f32 1.0, %v2233_v5 }
 0x30c   :  { %v2235_v42 = vpop.eup %2234 }
 0x30d   :  { %v2237_v30 = vpop.eup %2236  ;;  %v1105_v29 = vmul.f32 %v2235_v42, %v1103_v62  ;;  %2238 = vrcp.f32 %v1142_v58  ;;  %vm1110_vm4 = vweird.f32 %v2235_v42  ;;  %vm1148_vm13 = vweird.f32 %v1142_v58 }
 0x30e   :  { %v1124_v18 = vmul.f32 %v2237_v30, %v1122_v0  ;;  %2240 = vtanh.f32 %v1098_v63  ;;  %vm1129_vm5 = vweird.f32 %v2237_v30  ;;  %vm1111_vm8 = vmor %vm1109_vm6, %vm1110_vm4 }
 0x30f   :  { %v1106_v11 = vsub.f32 1.0, %v1105_v29  ;;  %vm1130_vm9 = vmor %vm1128_vm7, %vm1129_vm5  ;;  %v1154_v29 = vand.u32 2147483648, %v1142_v58 }
 0x310   :  { %v1125_v46 = vsub.f32 1.0, %v1124_v18 }
 0x311   :  { %v1107_v50 = vmul.f32 %v2235_v42, %v1106_v11  ;;  %v1155_v11 = vor.u32 1.1754944e-38, %v1154_v29 }
 0x312   :  { %v1126_v45 = vmul.f32 %v2237_v30, %v1125_v46 }
 0x313   :  { %v2239_v36 = vpop.eup %2238  ;;  %v1108_v19 = vadd.f32 %v2235_v42, %v1107_v50 }
 0x314   :  { %v1127_v23 = vadd.f32 %v2237_v30, %v1126_v45  ;;  %v1144_v31 = vmul.f32 %v2239_v36, %v1142_v58  ;;  %v2241_v55 = vpop.eup %2240  ;;  %vm1149_vm12 = vweird.f32 %v2239_v36 }
 0x315   :  { %v1112_v56 = vsel %vm1111_vm8, %v2235_v42, %v1108_v19  ;;  %v1152_v42 = vand.u32 2147483647, %v1142_v58  ;;  %vm1150_vm14 = vmor %vm1148_vm13, %vm1149_vm12 }
 0x316   :  { %v1117_v57 = vsel %vm1114_vm10, %v1116_v17, %v1112_v56  ;;  %v1131_v54 = vsel %vm1130_vm9, %v2237_v30, %v1127_v23  ;;  %v1145_v27 = vsub.f32 1.0, %v1144_v31 }
 0x317   :  { %v1136_v24 = vsel %vm1133_vm11, %v1135_v38, %v1131_v54  ;;  %v1159_v5 = vmul.f32 %v2241_v55, %v1117_v57  ;;  %vm1153_vm15 = vcmp.eq.f32.partialorder %v1152_v42, 8.507059e+37  ;;  %v3026_v38 = vld [vmem:[#allocation24_spill] sm:$0xff] }
 0x318   :  { %v1158_v39 = vmul.f32 %v1136_v24, %v2822_v28  ;;  %v1146_v63 = vmul.f32 %v2239_v36, %v1145_v27 }
 0x31a   :  { %v2866_v62 = vadd.f32 %v1159_v5, %v1158_v39  ;;  %v1147_v0 = vadd.f32 %v2239_v36, %v1146_v63 }
 0x31c   :  { %2242 = vtanh.f32 %v2866_v62  ;;  %v1151_v18 = vsel %vm1150_vm14, %v2239_v36, %v1147_v0 }
 0x31d   :  { %v1156_v46 = vsel %vm1153_vm15, %v1155_v11, %v1151_v18  ;;  %v3027_v11 = vld [vmem:[#allocation23_spill] sm:$0xff] }
 0x322   :  { %v2243_v30 = vpop.eup %2242 }
 0x323   :  { %v2869_v25 = vmul.f32 %v2243_v30, %v1156_v46 }
 0x325   :  { %v1163_v28 = vmax.f32 %v2827_v12, %v2869_v25  ;;  %v1171_v6 = vpack.c.bf16 %v2869_v25, %v2869_v25 }
 0x327   :  { %1180 = vmatmul.bf16.vlgmr.msrb.gmra.mxu0 %v1171_v6  ;;  %1193 = vmatmul.bf16.vlgmr.msrb.gmra.mxu1 %v1171_v6 }
 0x328   :  { %1206 = vmatmul.bf16.vlgmr.msrb.gmra.mxu2 %v1171_v6  ;;  %1219 = vmatmul.bf16.vlgmr.msrb.gmra.mxu3 %v1171_v6 }
 0x329   :  { %1428 = vmatpush.bf16.msrb.mxu0 %v2492_v37  ;;  %1441 = vmatpush.bf16.msrb.mxu1 %v2494_v41 }
 0x32a   :  { %1454 = vmatpush.bf16.msrb.mxu2 %v2496_v47  ;;  %1467 = vmatpush.bf16.msrb.mxu3 %v2499_v48 }
 0x32d   :  { %1429 = vmatpush.bf16.msrb.mxu0 %v2501_v49  ;;  %1442 = vmatpush.bf16.msrb.mxu1 %v2504_v53 }
 0x32e   :  { %1455 = vmatpush.bf16.msrb.mxu2 %v2507_v59  ;;  %1468 = vmatpush.bf16.msrb.mxu3 %v2511_v60 }
 0x331   :  { %1430 = vmatpush.bf16.msrb.mxu0 %v2513_v61  ;;  %1443 = vmatpush.bf16.msrb.mxu1 %v2516_v1 }
 0x332   :  { %1456 = vmatpush.bf16.msrb.mxu2 %v2519_v7  ;;  %1469 = vmatpush.bf16.msrb.mxu3 %v2523_v8 }
 0x335   :  { %1431 = vmatpush.bf16.msrb.mxu0 %v2525_v9  ;;  %1444 = vmatpush.bf16.msrb.mxu1 %v2528_v13 }
 0x336   :  { %1457 = vmatpush.bf16.msrb.mxu2 %v2531_v20  ;;  %1470 = vmatpush.bf16.msrb.mxu3 %v2535_v21 }
 0x339   :  { %1432 = vmatpush.bf16.msrb.mxu0 %v2537_v22  ;;  %1445 = vmatpush.bf16.msrb.mxu1 %v2540_v26 }
 0x33a   :  { %1458 = vmatpush.bf16.msrb.mxu2 %v2543_v32  ;;  %1471 = vmatpush.bf16.msrb.mxu3 %v2547_v33 }
 0x33d   :  { %1433 = vmatpush.bf16.msrb.mxu0 %v2549_v34  ;;  %1446 = vmatpush.bf16.msrb.mxu1 %v2552_v35 }
 0x33e   :  { %1459 = vmatpush.bf16.msrb.mxu2 %v2564_v52  ;;  %1472 = vmatpush.bf16.msrb.mxu3 %v2557_v43 }
 0x341   :  { %1434 = vmatpush.bf16.msrb.mxu0 %v2559_v44  ;;  %1447 = vmatpush.bf16.msrb.mxu1 %v2562_v51 }
 0x342   :  { %1460 = vmatpush.bf16.msrb.mxu2 %v2573_v4  ;;  %1473 = vmatpush.bf16.msrb.mxu3 %v2569_v2 }
 0x345   :  { %1435 = vmatpush.bf16.msrb.mxu0 %v2571_v3  ;;  %1448 = vmatpush.bf16.msrb.mxu1 %v2576_v10 }
 0x346   :  { %1461 = vmatpush.bf16.msrb.mxu2 %v2579_v14  ;;  %1474 = vmatpush.bf16.msrb.mxu3 %v2583_v15 }
 0x3a4   :  { %v1181_v58 = vpop.f32.mrf.mxu0  ;;  %v1194_v50 = vpop.f32.mrf.mxu1 }
 0x3a5   :  { %v1224_v45 = vadd.f32 %v1181_v58, %v3024_v40  ;;  %v1225_v36 = vadd.f32 %v1194_v50, %v3025_v16 }
 0x3a7   :  { %v2088_v19 = vmul.f32 -1.442695, %v1224_v45  ;;  %v2089_v17 = vmul.f32 -1.442695, %v1225_v36 }
 0x3a9   :  { %2244 = vpow2.f32 %v2088_v19 }
 0x3aa   :  { %2246 = vpow2.f32 %v2089_v17 }
 0x3ab   :  { %v1207_v23 = vpop.f32.mrf.mxu2  ;;  %v1220_v31 = vpop.f32.mrf.mxu3 }
 0x3ac   :  { %v1227_v56 = vadd.f32 %v1220_v31, %v3026_v38  ;;  %v1183_v55 = vpop.f32.mrf.mxu0  ;;  %v1196_v57 = vpop.f32.mrf.mxu1  ;;  %v1226_v30 = vadd.f32 %v1207_v23, %v3027_v11 }
 0x3ae   :  { %v2090_v54 = vmul.f32 -1.442695, %v1227_v56 }
 0x3af   :  { %v2245_v27 = vpop.eup %2244 }
 0x3b0   :  { %v2247_v24 = vpop.eup %2246  ;;  %v1231_v5 = vadd.f32 1.0, %v2245_v27  ;;  %2248 = vpow2.f32 %v2090_v54 }
 0x3b1   :  { %v1250_v39 = vadd.f32 1.0, %v2247_v24 }
 0x3b2   :  { %2250 = vrcp.f32 %v1231_v5  ;;  %v1243_v45 = vand.u32 2147483648, %v1231_v5  ;;  %v1241_v19 = vand.u32 2147483647, %v1231_v5  ;;  %vm1237_vm2 = vweird.f32 %v1231_v5 }
 0x3b3   :  { %2252 = vrcp.f32 %v1250_v39  ;;  %v1209_v63 = vpop.f32.mrf.mxu2  ;;  %v1222_v0 = vpop.f32.mrf.mxu3  ;;  %v1262_v16 = vand.u32 2147483648, %v1250_v39  ;;  %v1260_v31 = vand.u32 2147483647, %v1250_v39  ;;  %vm1256_vm3 = vweird.f32 %v1250_v39 }
 0x3b4   :  { %v1244_v23 = vor.u32 1.1754944e-38, %v1243_v45  ;;  %vm1242_vm6 = vcmp.eq.f32.partialorder %v1241_v19, 8.507059e+37 }
 0x3b5   :  { %v1263_v54 = vor.u32 1.1754944e-38, %v1262_v16  ;;  %vm1261_vm7 = vcmp.eq.f32.partialorder %v1260_v31, 8.507059e+37 }
 0x3b6   :  { %v2249_v29 = vpop.eup %2248 }
 0x3b7   :  { %v1270_v42 = vadd.f32 1.0, %v2249_v29 }
 0x3b8   :  { %v2251_v18 = vpop.eup %2250 }
 0x3b9   :  { %v2253_v46 = vpop.eup %2252  ;;  %v1233_v6 = vmul.f32 %v2251_v18, %v1231_v5  ;;  %2254 = vrcp.f32 %v1270_v42  ;;  %vm1238_vm0 = vweird.f32 %v2251_v18  ;;  %vm1276_vm9 = vweird.f32 %v1270_v42 }
 0x3ba   :  { %v1252_v58 = vmul.f32 %v2253_v46, %v1250_v39  ;;  %2256 = vtanh.f32 %v1226_v30  ;;  %vm1257_vm1 = vweird.f32 %v2253_v46  ;;  %vm1239_vm4 = vmor %vm1237_vm2, %vm1238_vm0 }
 0x3bb   :  { %v1234_v50 = vsub.f32 1.0, %v1233_v6  ;;  %vm1258_vm5 = vmor %vm1256_vm3, %vm1257_vm1 }
 0x3bc   :  { %v1253_v40 = vsub.f32 1.0, %v1252_v58 }
 0x3bd   :  { %v1235_v36 = vmul.f32 %v2251_v18, %v1234_v50  ;;  %v1282_v50 = vand.u32 2147483648, %v1270_v42 }
 0x3be   :  { %v1254_v17 = vmul.f32 %v2253_v46, %v1253_v40 }
 0x3bf   :  { %v2255_v38 = vpop.eup %2254  ;;  %v1236_v56 = vadd.f32 %v2251_v18, %v1235_v36  ;;  %v1283_v45 = vor.u32 1.1754944e-38, %v1282_v50 }
 0x3c0   :  { %v1255_v55 = vadd.f32 %v2253_v46, %v1254_v17  ;;  %v1272_v57 = vmul.f32 %v2255_v38, %v1270_v42  ;;  %v2257_v24 = vpop.eup %2256  ;;  %vm1277_vm8 = vweird.f32 %v2255_v38 }
 0x3c1   :  { %v1240_v27 = vsel %vm1239_vm4, %v2251_v18, %v1236_v56  ;;  %v1280_v18 = vand.u32 2147483647, %v1270_v42  ;;  %vm1278_vm10 = vmor %vm1276_vm9, %vm1277_vm8 }
 0x3c2   :  { %v1245_v63 = vsel %vm1242_vm6, %v1244_v23, %v1240_v27  ;;  %v1259_v0 = vsel %vm1258_vm5, %v2253_v46, %v1255_v55  ;;  %v1273_v29 = vsub.f32 1.0, %v1272_v57 }
 0x3c3   :  { %v1264_v11 = vsel %vm1261_vm7, %v1263_v54, %v1259_v0  ;;  %v1287_v30 = vmul.f32 %v2257_v24, %v1245_v63  ;;  %vm1281_vm11 = vcmp.eq.f32.partialorder %v1280_v18, 8.507059e+37 }
 0x3c4   :  { %v1286_v6 = vmul.f32 %v1264_v11, %v2866_v62  ;;  %v1274_v58 = vmul.f32 %v2255_v38, %v1273_v29 }
 0x3c6   :  { %v2912_v5 = vadd.f32 %v1287_v30, %v1286_v6  ;;  %v1275_v39 = vadd.f32 %v2255_v38, %v1274_v58 }
 0x3c8   :  { %2258 = vtanh.f32 %v2912_v5  ;;  %v1279_v40 = vsel %vm1278_vm10, %v2255_v38, %v1275_v39 }
 0x3c9   :  { %v1284_v16 = vsel %vm1281_vm11, %v1283_v45, %v1279_v40 }
 0x3ce   :  { %v2259_v46 = vpop.eup %2258 }
 0x3cf   :  { %v1290_v36 = vmul.f32 %v2259_v46, %v1284_v16 }
 0x3d1   :  { %v2918_v62 = vmax.f32 %v1163_v28, %v1290_v36  ;;  %v1299_v19 = vpack.c.bf16 %v1290_v36, %v1290_v36 }
 0x3d3   :  { %1308 = vmatmul.bf16.vlgmr.msra.gmra.mxu0 %v1299_v19  ;;  %1321 = vmatmul.bf16.vlgmr.msra.gmra.mxu1 %v1299_v19 }
 0x3d4   :  { %1334 = vmatmul.bf16.vlgmr.msra.gmra.mxu2 %v1299_v19  ;;  %1347 = vmatmul.bf16.vlgmr.msra.gmra.mxu3 %v1299_v19 }
 0x3d5   :  { %1556 = vmatpush.bf16.msra.mxu0 %v2492_v37  ;;  %1569 = vmatpush.bf16.msra.mxu1 %v2494_v41 }
 0x3d6   :  { %1582 = vmatpush.bf16.msra.mxu2 %v2496_v47  ;;  %1595 = vmatpush.bf16.msra.mxu3 %v2499_v48  ;;  %v3028_v47 = vld [vmem:[#allocation25_spill] sm:$0xff] }
 0x3d9   :  { %1557 = vmatpush.bf16.msra.mxu0 %v2501_v49  ;;  %1570 = vmatpush.bf16.msra.mxu1 %v2504_v53  ;;  %v3029_v49 = vld [vmem:[#allocation26_spill] sm:$0xff] }
 0x3da   :  { %1583 = vmatpush.bf16.msra.mxu2 %v2507_v59  ;;  %1596 = vmatpush.bf16.msra.mxu3 %v2511_v60 }
 0x3dd   :  { %1558 = vmatpush.bf16.msra.mxu0 %v2513_v61  ;;  %1571 = vmatpush.bf16.msra.mxu1 %v2516_v1 }
 0x3de   :  { %1584 = vmatpush.bf16.msra.mxu2 %v2519_v7  ;;  %1597 = vmatpush.bf16.msra.mxu3 %v2523_v8  ;;  %v3030_v7 = vld [vmem:[#allocation28_spill] sm:$0xff] }
 0x3e1   :  { %1559 = vmatpush.bf16.msra.mxu0 %v2525_v9  ;;  %1572 = vmatpush.bf16.msra.mxu1 %v2528_v13 }
 0x3e2   :  { %1585 = vmatpush.bf16.msra.mxu2 %v2531_v20  ;;  %1598 = vmatpush.bf16.msra.mxu3 %v2535_v21 }
 0x3e5   :  { %1560 = vmatpush.bf16.msra.mxu0 %v2537_v22  ;;  %1573 = vmatpush.bf16.msra.mxu1 %v2540_v26 }
 0x3e6   :  { %1586 = vmatpush.bf16.msra.mxu2 %v2543_v32  ;;  %1599 = vmatpush.bf16.msra.mxu3 %v2547_v33 }
 0x3e9   :  { %1561 = vmatpush.bf16.msra.mxu0 %v2549_v34  ;;  %1574 = vmatpush.bf16.msra.mxu1 %v2552_v35 }
 0x3ea   :  { %1587 = vmatpush.bf16.msra.mxu2 %v2564_v52  ;;  %1600 = vmatpush.bf16.msra.mxu3 %v2557_v43 }
 0x3ed   :  { %1562 = vmatpush.bf16.msra.mxu0 %v2559_v44  ;;  %1575 = vmatpush.bf16.msra.mxu1 %v2562_v51  ;;  %v3031_v51 = vld [vmem:[#allocation27_spill] sm:$0xff] }
 0x3ee   :  { %1588 = vmatpush.bf16.msra.mxu2 %v2573_v4  ;;  %1601 = vmatpush.bf16.msra.mxu3 %v2569_v2 }
 0x3f1   :  { %1563 = vmatpush.bf16.msra.mxu0 %v2571_v3  ;;  %1576 = vmatpush.bf16.msra.mxu1 %v2576_v10 }
 0x3f2   :  { %1589 = vmatpush.bf16.msra.mxu2 %v2579_v14  ;;  %1602 = vmatpush.bf16.msra.mxu3 %v2583_v15 }
 0x450   :  { %v1309_v37 = vpop.f32.mrf.mxu0  ;;  %v1322_v41 = vpop.f32.mrf.mxu1 }
 0x451   :  { %v1352_v48 = vadd.f32 %v1309_v37, %v3028_v47  ;;  %v1353_v53 = vadd.f32 %v1322_v41, %v3029_v49  ;;  %v3032_v47 = vld [vmem:[#allocation29_spill] sm:$0xff]  ;;  %v3033_v49 = vld [vmem:[#allocation30_spill] sm:$0xff] }
 0x453   :  { %v2091_v59 = vmul.f32 -1.442695, %v1352_v48  ;;  %v2092_v60 = vmul.f32 -1.442695, %v1353_v53 }
 0x455   :  { %2260 = vpow2.f32 %v2091_v59 }
 0x456   :  { %2262 = vpow2.f32 %v2092_v60 }
 0x457   :  { %v1335_v61 = vpop.f32.mrf.mxu2  ;;  %v1348_v1 = vpop.f32.mrf.mxu3 }
 0x458   :  { %v1355_v8 = vadd.f32 %v1348_v1, %v3030_v7  ;;  %v1311_v9 = vpop.f32.mrf.mxu0  ;;  %v1324_v13 = vpop.f32.mrf.mxu1  ;;  %v1354_v52 = vadd.f32 %v1335_v61, %v3031_v51  ;;  %v3034_v7 = vld [vmem:[#allocation32_spill] sm:$0xff]  ;;  %v3035_v51 = vld [vmem:[#allocation31_spill] sm:$0xff] }
 0x45a   :  { %v2093_v20 = vmul.f32 -1.442695, %v1355_v8 }
 0x45b   :  { %v2261_v21 = vpop.eup %2260 }
 0x45c   :  { %v2263_v22 = vpop.eup %2262  ;;  %v1359_v26 = vadd.f32 1.0, %v2261_v21  ;;  %2264 = vpow2.f32 %v2093_v20 }
 0x45d   :  { %v1378_v32 = vadd.f32 1.0, %v2263_v22 }
 0x45e   :  { %2266 = vrcp.f32 %v1359_v26  ;;  %v1371_v15 = vand.u32 2147483648, %v1359_v26  ;;  %v1369_v28 = vand.u32 2147483647, %v1359_v26  ;;  %vm1365_vm14 = vweird.f32 %v1359_v26 }
 0x45f   :  { %2268 = vrcp.f32 %v1378_v32  ;;  %v1337_v33 = vpop.f32.mrf.mxu2  ;;  %v1350_v34 = vpop.f32.mrf.mxu3  ;;  %v1390_v12 = vand.u32 2147483648, %v1378_v32  ;;  %v1388_v17 = vand.u32 2147483647, %v1378_v32  ;;  %vm1384_vm15 = vweird.f32 %v1378_v32 }
 0x460   :  { %v1372_v56 = vor.u32 1.1754944e-38, %v1371_v15  ;;  %vm1370_vm2 = vcmp.eq.f32.partialorder %v1369_v28, 8.507059e+37 }
 0x461   :  { %v1391_v57 = vor.u32 1.1754944e-38, %v1390_v12  ;;  %vm1389_vm3 = vcmp.eq.f32.partialorder %v1388_v17, 8.507059e+37 }
 0x462   :  { %v2265_v35 = vpop.eup %2264 }
 0x463   :  { %v1398_v43 = vadd.f32 1.0, %v2265_v35 }
 0x464   :  { %v2267_v44 = vpop.eup %2266 }
 0x465   :  { %v2269_v2 = vpop.eup %2268  ;;  %v1361_v3 = vmul.f32 %v2267_v44, %v1359_v26  ;;  %2270 = vrcp.f32 %v1398_v43  ;;  %vm1366_vm12 = vweird.f32 %v2267_v44  ;;  %v1410_v50 = vand.u32 2147483648, %v1398_v43 }
 0x466   :  { %v1380_v4 = vmul.f32 %v2269_v2, %v1378_v32  ;;  %2272 = vtanh.f32 %v1354_v52  ;;  %vm1385_vm13 = vweird.f32 %v2269_v2  ;;  %vm1367_vm0 = vmor %vm1365_vm14, %vm1366_vm12  ;;  %vm1404_vm5 = vweird.f32 %v1398_v43 }
 0x467   :  { %v1362_v10 = vsub.f32 1.0, %v1361_v3  ;;  %vm1386_vm1 = vmor %vm1384_vm15, %vm1385_vm13  ;;  %v1408_v18 = vand.u32 2147483647, %v1398_v43  ;;  %v1411_v45 = vor.u32 1.1754944e-38, %v1410_v50 }
 0x468   :  { %v1381_v14 = vsub.f32 1.0, %v1380_v4 }
 0x469   :  { %v1363_v25 = vmul.f32 %v2267_v44, %v1362_v10  ;;  %vm1409_vm7 = vcmp.eq.f32.partialorder %v1408_v18, 8.507059e+37 }
 0x46a   :  { %v1382_v42 = vmul.f32 %v2269_v2, %v1381_v14 }
 0x46b   :  { %v2271_v31 = vpop.eup %2270  ;;  %v1364_v38 = vadd.f32 %v2267_v44, %v1363_v25 }
 0x46c   :  { %v1383_v23 = vadd.f32 %v2269_v2, %v1382_v42  ;;  %v1400_v55 = vmul.f32 %v2271_v31, %v1398_v43  ;;  %v2273_v27 = vpop.eup %2272  ;;  %vm1405_vm4 = vweird.f32 %v2271_v31 }
 0x46d   :  { %v1368_v54 = vsel %vm1367_vm0, %v2267_v44, %v1364_v38  ;;  %vm1406_vm6 = vmor %vm1404_vm5, %vm1405_vm4 }
 0x46e   :  { %v1373_v24 = vsel %vm1370_vm2, %v1372_v56, %v1368_v54  ;;  %v1387_v63 = vsel %vm1386_vm1, %v2269_v2, %v1383_v23  ;;  %v1401_v0 = vsub.f32 1.0, %v1400_v55 }
 0x46f   :  { %v1392_v29 = vsel %vm1389_vm3, %v1391_v57, %v1387_v63  ;;  %v1415_v11 = vmul.f32 %v2273_v27, %v1373_v24 }
 0x470   :  { %v1414_v30 = vmul.f32 %v1392_v29, %v2912_v5  ;;  %v1402_v6 = vmul.f32 %v2271_v31, %v1401_v0 }
 0x472   :  { %v2957_v58 = vadd.f32 %v1415_v11, %v1414_v30  ;;  %v1403_v39 = vadd.f32 %v2271_v31, %v1402_v6 }
 0x474   :  { %2274 = vtanh.f32 %v2957_v58  ;;  %v1407_v40 = vsel %vm1406_vm6, %v2271_v31, %v1403_v39 }
 0x475   :  { %v1412_v16 = vsel %vm1409_vm7, %v1411_v45, %v1407_v40 }
 0x47a   :  { %v2275_v46 = vpop.eup %2274 }
 0x47b   :  { %v2960_v36 = vmul.f32 %v2275_v46, %v1412_v16 }
 0x47d   :  { %v1419_v5 = vmax.f32 %v2918_v62, %v2960_v36  ;;  %v1427_v19 = vpack.c.bf16 %v2960_v36, %v2960_v36  ;;  %v3038_v62 = vld [vmem:[#allocation36_spill] sm:$0xff] }
 0x47f   :  { %1436 = vmatmul.bf16.vlgmr.msrb.gmra.mxu0 %v1427_v19  ;;  %1449 = vmatmul.bf16.vlgmr.msrb.gmra.mxu1 %v1427_v19 }
 0x480   :  { %1462 = vmatmul.bf16.vlgmr.msrb.gmra.mxu2 %v1427_v19  ;;  %1475 = vmatmul.bf16.vlgmr.msrb.gmra.mxu3 %v1427_v19 }
 0x4fc   :  { %v1437_v37 = vpop.f32.mrf.mxu0  ;;  %v1450_v41 = vpop.f32.mrf.mxu1 }
 0x4fd   :  { %v1480_v48 = vadd.f32 %v1437_v37, %v3032_v47  ;;  %v1481_v53 = vadd.f32 %v1450_v41, %v3033_v49  ;;  %v3036_v49 = vld [vmem:[#allocation33_spill] sm:$0xff] }
 0x4ff   :  { %v2094_v59 = vmul.f32 -1.442695, %v1480_v48  ;;  %v2095_v60 = vmul.f32 -1.442695, %v1481_v53 }
 0x501   :  { %2276 = vpow2.f32 %v2094_v59  ;;  %v3037_v59 = vld [vmem:[#allocation34_spill] sm:$0xff] }
 0x502   :  { %2278 = vpow2.f32 %v2095_v60 }
 0x503   :  { %v1463_v61 = vpop.f32.mrf.mxu2  ;;  %v1476_v1 = vpop.f32.mrf.mxu3 }
 0x504   :  { %v1483_v8 = vadd.f32 %v1476_v1, %v3034_v7  ;;  %v1439_v9 = vpop.f32.mrf.mxu0  ;;  %v1452_v13 = vpop.f32.mrf.mxu1  ;;  %v1482_v52 = vadd.f32 %v1463_v61, %v3035_v51 }
 0x506   :  { %v2096_v20 = vmul.f32 -1.442695, %v1483_v8 }
 0x507   :  { %v2277_v21 = vpop.eup %2276 }
 0x508   :  { %v2279_v22 = vpop.eup %2278  ;;  %v1487_v26 = vadd.f32 1.0, %v2277_v21  ;;  %2280 = vpow2.f32 %v2096_v20 }
 0x509   :  { %v1506_v32 = vadd.f32 1.0, %v2279_v22 }
 0x50a   :  { %2282 = vrcp.f32 %v1487_v26  ;;  %v1499_v15 = vand.u32 2147483648, %v1487_v26  ;;  %v1497_v28 = vand.u32 2147483647, %v1487_v26  ;;  %vm1493_vm10 = vweird.f32 %v1487_v26 }
 0x50b   :  { %2284 = vrcp.f32 %v1506_v32  ;;  %v1465_v33 = vpop.f32.mrf.mxu2  ;;  %v1478_v34 = vpop.f32.mrf.mxu3  ;;  %v1518_v12 = vand.u32 2147483648, %v1506_v32  ;;  %v1516_v17 = vand.u32 2147483647, %v1506_v32  ;;  %vm1512_vm11 = vweird.f32 %v1506_v32 }
 0x50c   :  { %v1500_v56 = vor.u32 1.1754944e-38, %v1499_v15  ;;  %vm1498_vm14 = vcmp.eq.f32.partialorder %v1497_v28, 8.507059e+37 }
 0x50d   :  { %v1519_v57 = vor.u32 1.1754944e-38, %v1518_v12  ;;  %vm1517_vm15 = vcmp.eq.f32.partialorder %v1516_v17, 8.507059e+37 }
 0x50e   :  { %v2281_v35 = vpop.eup %2280 }
 0x50f   :  { %v1526_v43 = vadd.f32 1.0, %v2281_v35 }
 0x510   :  { %v2283_v44 = vpop.eup %2282 }
 0x511   :  { %v2285_v2 = vpop.eup %2284  ;;  %v1489_v3 = vmul.f32 %v2283_v44, %v1487_v26  ;;  %2286 = vrcp.f32 %v1526_v43  ;;  %vm1494_vm8 = vweird.f32 %v2283_v44  ;;  %v1538_v18 = vand.u32 2147483648, %v1526_v43 }
 0x512   :  { %v1508_v4 = vmul.f32 %v2285_v2, %v1506_v32  ;;  %2288 = vtanh.f32 %v1482_v52  ;;  %vm1513_vm9 = vweird.f32 %v2285_v2  ;;  %vm1495_vm12 = vmor %vm1493_vm10, %vm1494_vm8  ;;  %vm1532_vm1 = vweird.f32 %v1526_v43 }
 0x513   :  { %v1490_v10 = vsub.f32 1.0, %v1489_v3  ;;  %vm1514_vm13 = vmor %vm1512_vm11, %vm1513_vm9  ;;  %v1536_v40 = vand.u32 2147483647, %v1526_v43  ;;  %v1539_v46 = vor.u32 1.1754944e-38, %v1538_v18 }
 0x514   :  { %v1509_v14 = vsub.f32 1.0, %v1508_v4 }
 0x515   :  { %v1491_v25 = vmul.f32 %v2283_v44, %v1490_v10  ;;  %vm1537_vm3 = vcmp.eq.f32.partialorder %v1536_v40, 8.507059e+37 }
 0x516   :  { %v1510_v42 = vmul.f32 %v2285_v2, %v1509_v14 }
 0x517   :  { %v2287_v31 = vpop.eup %2286  ;;  %v1492_v38 = vadd.f32 %v2283_v44, %v1491_v25 }
 0x518   :  { %v1511_v23 = vadd.f32 %v2285_v2, %v1510_v42  ;;  %v1528_v55 = vmul.f32 %v2287_v31, %v1526_v43  ;;  %v2289_v27 = vpop.eup %2288  ;;  %vm1533_vm0 = vweird.f32 %v2287_v31 }
 0x519   :  { %v1496_v54 = vsel %vm1495_vm12, %v2283_v44, %v1492_v38  ;;  %vm1534_vm2 = vmor %vm1532_vm1, %vm1533_vm0  ;;  %v3039_v44 = vld [vmem:[#allocation35_spill] sm:$0xff]  ;;  %vm1693_vm0 = vcmask 1043458   ;;  %vm1677_vm1 = vcmask 1041408  }
 0x51a   :  { %v1501_v24 = vsel %vm1498_vm14, %v1500_v56, %v1496_v54  ;;  %v1515_v63 = vsel %vm1514_vm13, %v2285_v2, %v1511_v23  ;;  %v1529_v0 = vsub.f32 1.0, %v1528_v55 }
 0x51b   :  { %v1520_v29 = vsel %vm1517_vm15, %v1519_v57, %v1515_v63  ;;  %v1543_v11 = vmul.f32 %v2289_v27, %v1501_v24 }
 0x51c   :  { %v1542_v30 = vmul.f32 %v1520_v29, %v2957_v58  ;;  %v1530_v6 = vmul.f32 %v2287_v31, %v1529_v0 }
 0x51e   :  { %v2971_v39 = vadd.f32 %v1543_v11, %v1542_v30  ;;  %v1531_v50 = vadd.f32 %v2287_v31, %v1530_v6 }
 0x520   :  { %2290 = vtanh.f32 %v2971_v39  ;;  %v1535_v45 = vsel %vm1534_vm2, %v2287_v31, %v1531_v50  ;;  %vm1709_vm2 = vcmask 1045508  }
 0x521   :  { %v1540_v19 = vsel %vm1537_vm3, %v1539_v46, %v1535_v45 }
 0x526   :  { %v2291_v16 = vpop.eup %2290 }
 0x527   :  { %v1546_v37 = vmul.f32 %v2291_v16, %v1540_v19 }
 0x529   :  { %v2977_v58 = vmax.f32 %v1419_v5, %v1546_v37  ;;  %v1555_v41 = vpack.c.bf16 %v1546_v37, %v1546_v37 }
 0x52b   :  { %1564 = vmatmul.bf16.vlgmr.msra.gmra.mxu0 %v1555_v41  ;;  %1577 = vmatmul.bf16.vlgmr.msra.gmra.mxu1 %v1555_v41 }
 0x52c   :  { %1590 = vmatmul.bf16.vlgmr.msra.gmra.mxu2 %v1555_v41  ;;  %1603 = vmatmul.bf16.vlgmr.msra.gmra.mxu3 %v1555_v41 }
 0x5a8   :  { %v1565_v47 = vpop.f32.mrf.mxu0  ;;  %v1578_v48 = vpop.f32.mrf.mxu1 }
 0x5a9   :  { %v1608_v53 = vadd.f32 %v1565_v47, %v3036_v49  ;;  %v1609_v60 = vadd.f32 %v1578_v48, %v3037_v59 }
 0x5ab   :  { %v2097_v61 = vmul.f32 -1.442695, %v1608_v53  ;;  %v2098_v1 = vmul.f32 -1.442695, %v1609_v60 }
 0x5ad   :  { %2292 = vpow2.f32 %v2097_v61 }
 0x5ae   :  { %2294 = vpow2.f32 %v2098_v1 }
 0x5af   :  { %v1591_v7 = vpop.f32.mrf.mxu2  ;;  %v1604_v8 = vpop.f32.mrf.mxu3 }
 0x5b0   :  { %v1611_v36 = vadd.f32 %v1604_v8, %v3038_v62  ;;  %v1567_v5 = vpop.f32.mrf.mxu0  ;;  %v1580_v9 = vpop.f32.mrf.mxu1  ;;  %v1610_v51 = vadd.f32 %v1591_v7, %v3039_v44 }
 0x5b2   :  { %v2099_v13 = vmul.f32 -1.442695, %v1611_v36 }
 0x5b3   :  { %v2293_v20 = vpop.eup %2292 }
 0x5b4   :  { %v2295_v21 = vpop.eup %2294  ;;  %v1615_v22 = vadd.f32 1.0, %v2293_v20  ;;  %2296 = vpow2.f32 %v2099_v13 }
 0x5b5   :  { %v1634_v26 = vadd.f32 1.0, %v2295_v21 }
 0x5b6   :  { %2298 = vrcp.f32 %v1615_v22  ;;  %v1627_v14 = vand.u32 2147483648, %v1615_v22  ;;  %v1625_v25 = vand.u32 2147483647, %v1615_v22  ;;  %vm1621_vm6 = vweird.f32 %v1615_v22 }
 0x5b7   :  { %2300 = vrcp.f32 %v1634_v26  ;;  %v1593_v32 = vpop.f32.mrf.mxu2  ;;  %v1606_v33 = vpop.f32.mrf.mxu3  ;;  %v1646_v15 = vand.u32 2147483648, %v1634_v26  ;;  %v1644_v42 = vand.u32 2147483647, %v1634_v26  ;;  %vm1640_vm7 = vweird.f32 %v1634_v26 }
 0x5b8   :  { %v1628_v38 = vor.u32 1.1754944e-38, %v1627_v14  ;;  %vm1626_vm10 = vcmp.eq.f32.partialorder %v1625_v25, 8.507059e+37 }
 0x5b9   :  { %v1647_v55 = vor.u32 1.1754944e-38, %v1646_v15  ;;  %vm1645_vm11 = vcmp.eq.f32.partialorder %v1644_v42, 8.507059e+37 }
 0x5ba   :  { %v2297_v34 = vpop.eup %2296 }
 0x5bb   :  { %v1654_v35 = vadd.f32 1.0, %v2297_v34 }
 0x5bc   :  { %v2299_v43 = vpop.eup %2298 }
 0x5bd   :  { %v2301_v52 = vpop.eup %2300  ;;  %v1617_v2 = vmul.f32 %v2299_v43, %v1615_v22  ;;  %2302 = vrcp.f32 %v1654_v35  ;;  %vm1622_vm4 = vweird.f32 %v2299_v43  ;;  %v1666_v18 = vand.u32 2147483648, %v1654_v35 }
 0x5be   :  { %v1636_v3 = vmul.f32 %v2301_v52, %v1634_v26  ;;  %2304 = vtanh.f32 %v1610_v51  ;;  %vm1641_vm5 = vweird.f32 %v2301_v52  ;;  %vm1623_vm8 = vmor %vm1621_vm6, %vm1622_vm4  ;;  %vm1660_vm13 = vweird.f32 %v1654_v35 }
 0x5bf   :  { %v1618_v4 = vsub.f32 1.0, %v1617_v2  ;;  %vm1642_vm9 = vmor %vm1640_vm7, %vm1641_vm5  ;;  %v1664_v40 = vand.u32 2147483647, %v1654_v35  ;;  %v1667_v46 = vor.u32 1.1754944e-38, %v1666_v18 }
 0x5c0   :  { %v1637_v10 = vsub.f32 1.0, %v1636_v3 }
 0x5c1   :  { %v1619_v12 = vmul.f32 %v2299_v43, %v1618_v4  ;;  %vm1665_vm15 = vcmp.eq.f32.partialorder %v1664_v40, 8.507059e+37 }
 0x5c2   :  { %v1638_v28 = vmul.f32 %v2301_v52, %v1637_v10 }
 0x5c3   :  { %v2303_v17 = vpop.eup %2302  ;;  %v1620_v31 = vadd.f32 %v2299_v43, %v1619_v12 }
 0x5c4   :  { %v1639_v56 = vadd.f32 %v2301_v52, %v1638_v28  ;;  %v1656_v23 = vmul.f32 %v2303_v17, %v1654_v35  ;;  %v2305_v54 = vpop.eup %2304  ;;  %vm1661_vm12 = vweird.f32 %v2303_v17 }
 0x5c5   :  { %v1624_v57 = vsel %vm1623_vm8, %v2299_v43, %v1620_v31  ;;  %vm1662_vm14 = vmor %vm1660_vm13, %vm1661_vm12 }
 0x5c6   :  { %v1629_v27 = vsel %vm1626_vm10, %v1628_v38, %v1624_v57  ;;  %v1643_v24 = vsel %vm1642_vm9, %v2301_v52, %v1639_v56  ;;  %v1657_v63 = vsub.f32 1.0, %v1656_v23 }
 0x5c7   :  { %v1648_v0 = vsel %vm1645_vm11, %v1647_v55, %v1643_v24  ;;  %v1671_v29 = vmul.f32 %v2305_v54, %v1629_v27  ;;  %v2453_v54 = vmov 0.0  }
 0x5c8   :  { %v1670_v11 = vmul.f32 %v1648_v0, %v2971_v39  ;;  %v1658_v30 = vmul.f32 %v2303_v17, %v1657_v63 }
 0x5ca   :  { %v1672_v6 = vadd.f32 %v1671_v29, %v1670_v11  ;;  %v1659_v50 = vadd.f32 %v2303_v17, %v1658_v30 }
 0x5cc   :  { %2306 = vtanh.f32 %v1672_v6  ;;  %v1663_v45 = vsel %vm1662_vm14, %v2303_v17, %v1659_v50 }
 0x5cd   :  { %v1668_v19 = vsel %vm1665_vm15, %v1667_v46, %v1663_v45 }
 0x5d2   :  { %v2307_v16 = vpop.eup %2306 }
 0x5d3   :  { %v1674_v37 = vmul.f32 %v2307_v16, %v1668_v19 }
 0x5d5   :  { %v1675_v41 = vmax.f32 %v2977_v58, %v1674_v37 }
 0x5d7   :  { %v1676_v39 = vmul.f32 %v1675_v41, %v1675_v41 }
 0x5d9   :  { %v1694_v47 = vsel %vm1693_vm0, %v1676_v39, 0.0  ;;  %v1678_v48 = vsel %vm1677_vm1, %v1676_v39, 0.0  ;;  %v1710_v49 = vsel %vm1709_vm2, %v1676_v39, 0.0 }
 0x5da   :  { %1695 = vadd.xlane.f32.xlu0 %v1694_v47  ;;  %1679 = vadd.xlane.f32.xlu1 %v1678_v48 }
 0x5e2   :  { %1711 = vadd.xlane.f32.xlu0 %v1710_v49 }
 0x64d   :  { %v1696_v53 = vpop.xlane.xlu0 %1695  ;;  %v1680_v59 = vpop.xlane.xlu1 %1679 }
 0x64e   :  { %v1697_v60 = vmax.f32 %v1696_v53, 1e-24  ;;  %v1681_v61 = vmax.f32 %v1680_v59, 1e-24 }
 0x650   :  { %2308 = vrsqrt.f32 %v1697_v60  ;;  %vm1704_vm5 = vweird.f32 %v1697_v60  ;;  %vm1688_vm7 = vweird.f32 %v1681_v61 }
 0x651   :  { %2310 = vrsqrt.f32 %v1681_v61 }
 0x655   :  { %v1712_v1 = vpop.xlane.xlu0 %1711 }
 0x656   :  { %v2309_v7 = vpop.eup %2308  ;;  %v1713_v58 = vmax.f32 %v1712_v1, 1e-24 }
 0x657   :  { %v2311_v8 = vpop.eup %2310  ;;  %v1699_v62 = vmul.f32 %v2309_v7, %v1697_v60  ;;  %vm1705_vm3 = vweird.f32 %v2309_v7 }
 0x658   :  { %v1683_v36 = vmul.f32 %v2311_v8, %v1681_v61  ;;  %2312 = vrsqrt.f32 %v1713_v58  ;;  %vm1689_vm4 = vweird.f32 %v2311_v8  ;;  %vm1706_vm6 = vmor %vm1704_vm5, %vm1705_vm3  ;;  %vm1720_vm10 = vweird.f32 %v1713_v58 }
 0x659   :  { %v1700_v5 = vmul.f32 %v2309_v7, %v1699_v62  ;;  %vm1690_vm8 = vmor %vm1688_vm7, %vm1689_vm4 }
 0x65a   :  { %v1684_v9 = vmul.f32 %v2311_v8, %v1683_v36 }
 0x65b   :  { %v1701_v13 = vmul.f32 0.5, %v1700_v5 }
 0x65c   :  { %v1685_v20 = vmul.f32 0.5, %v1684_v9 }
 0x65d   :  { %v1702_v21 = vsub.f32 1.5, %v1701_v13 }
 0x65e   :  { %v2313_v22 = vpop.eup %2312  ;;  %v1686_v26 = vsub.f32 1.5, %v1685_v20 }
 0x65f   :  { %v1703_v32 = vmul.f32 %v2309_v7, %v1702_v21  ;;  %v1715_v33 = vmul.f32 %v2313_v22, %v1713_v58  ;;  %vm1721_vm9 = vweird.f32 %v2313_v22 }
 0x660   :  { %v1687_v34 = vmul.f32 %v2311_v8, %v1686_v26  ;;  %vm1722_vm11 = vmor %vm1720_vm10, %vm1721_vm9 }
 0x661   :  { %v1716_v35 = vmul.f32 %v2313_v22, %v1715_v33  ;;  %v1707_v43 = vsel %vm1706_vm6, %v2309_v7, %v1703_v32 }
 0x662   :  { %v1691_v44 = vsel %vm1690_vm8, %v2311_v8, %v1687_v34  ;;  %v1708_v51 = vmul.f32 %v1707_v43, %v1675_v41 }
 0x663   :  { %v1717_v52 = vmul.f32 0.5, %v1716_v35  ;;  %v1692_v2 = vmul.f32 %v1691_v44, %v1675_v41 }
 0x664   :  { %v1726_v3 = vrot.slane %v1708_v51, 2 }
 0x665   :  { %v1718_v4 = vsub.f32 1.5, %v1717_v52 }
 0x666   :  { %v1728_v10 = vmul.f32 %v1726_v3, %v1692_v2 }
 0x667   :  { %v1719_v14 = vmul.f32 %v2313_v22, %v1718_v4 }
 0x668   :  { %v1729_v15 = vsel %vm1677_vm1, %v1728_v10, 0.0 }
 0x669   :  { %1730 = vadd.xlane.f32.xlu1 %v1729_v15  ;;  %v1723_v12 = vsel %vm1722_vm11, %v2313_v22, %v1719_v14 }
 0x66a   :  { %v1724_v25 = vmul.f32 %v1723_v12, %v1675_v41 }
 0x66c   :  { %v1734_v28 = vrot.slane %v1724_v25, 4 }
 0x66e   :  { %v1736_v42 = vmul.f32 %v1734_v28, %v1692_v2 }
 0x670   :  { %v1737_v17 = vsel %vm1677_vm1, %v1736_v42, 0.0 }
 0x671   :  { %1738 = vadd.xlane.f32.xlu2 %v1737_v17 }
 0x6dc   :  { %v1731_v31 = vpop.xlane.xlu1 %1730 }
 0x6dd   :  { %v1732_v56 = vsub.f32 1.0, %v1731_v31 }
 0x6e4   :  { %v1739_v38 = vpop.xlane.xlu2 %1738 }
 0x6e5   :  { %v1740_v23 = vsub.f32 1.0, %v1739_v38 }
 0x6e7   :  { %v1741_v55 = vsub.f32 %v1732_v56, %v1740_v23 }
 0x6e9   :  { %v1742_v57 = vadd.f32 0.1, %v1741_v55 }
 0x6eb   :  { %vm1743_vm12 = vcmp.gt.f32.partialorder %v1742_v57, 0.0 }
 0x6ec   :  { %v2100_v27 = vsel %vm1743_vm12, 1.0, %v2453_v54  ;;  %v1744_v0 = vsel %vm1743_vm12, %v1742_v57, 0.0 }
 0x6ed   :  { %v1754_v24 = vsel %vm1677_vm1, %v2100_v27, 0.0  ;;  %v1745_v11 = vsel %vm1677_vm1, %v1744_v0, 0.0  ;;  %vm1776_vm1 = vcmask 0  }
 0x6ee   :  { %v1755_v63 = vrot.slane %v1754_v24, 4  ;;  %v1746_v50 = vrot.slane %v1745_v11, 4 }
 0x6f0   :  { %v1756_v29 = vadd.f32 %v1755_v63, %v1754_v24  ;;  %v1747_v45 = vadd.f32 %v1746_v50, %v1745_v11 }
 0x6f2   :  { %v1757_v30 = vrot.slane %v1756_v29, 2  ;;  %v1748_v46 = vrot.slane %v1747_v45, 2 }
 0x6f4   :  { %v1758_v6 = vadd.f32 %v1757_v30, %v1756_v29  ;;  %v1749_v19 = vadd.f32 %v1748_v46, %v1747_v45 }
 0x6f6   :  { %v1759_v18 = vrot.slane %v1758_v6, 1  ;;  %v1750_v47 = vrot.slane %v1749_v19, 1 }
 0x6f8   :  { %v1760_v40 = vadd.f32 %v1759_v18, %v1758_v6  ;;  %v1751_v60 = vadd.f32 %v1750_v47, %v1749_v19 }
 0x6fa   :  { %2314 = vrcp.f32 %v1760_v40  ;;  %v1772_v39 = vand.u32 2147483648, %v1760_v40  ;;  %v1770_v49 = vand.u32 2147483647, %v1760_v40  ;;  %vm1766_vm14 = vweird.f32 %v1760_v40 }
 0x6fc   :  { %v1773_v59 = vor.u32 1.1754944e-38, %v1772_v39  ;;  %vm1771_vm0 = vcmp.eq.f32.partialorder %v1770_v49, 8.507059e+37 }
 0x700   :  { %v2315_v16 = vpop.eup %2314 }
 0x701   :  { %v1762_v37 = vmul.f32 %v2315_v16, %v1760_v40  ;;  %vm1767_vm13 = vweird.f32 %v2315_v16 }
 0x702   :  { %vm1768_vm15 = vmor %vm1766_vm14, %vm1767_vm13 }
 0x703   :  { %v1763_v41 = vsub.f32 1.0, %v1762_v37 }
 0x705   :  { %v1764_v48 = vmul.f32 %v2315_v16, %v1763_v41 }
 0x707   :  { %v1765_v53 = vadd.f32 %v2315_v16, %v1764_v48 }
 0x709   :  { %v1769_v61 = vsel %vm1768_vm15, %v2315_v16, %v1765_v53 }
 0x70a   :  { %v1774_v1 = vsel %vm1771_vm0, %v1773_v59, %v1769_v61 }
 0x70b   :  { %v1775_v7 = vmul.f32 %v1774_v1, %v1751_v60 }
 0x70d   :  { %1777 = vst.msk [vmem:[#allocation11] sm:$0x1] %vm1776_vm1, %v1775_v7 }
 0x70e   :  { %1788 = dma.vmem_to_hbm [thread:$0]  %s1784_s3, 16, %s1786_s13, [#allocation5]  }
 0x70f   :  { %2442 = dma.done.wait [#allocation5], 16  }
 0x710   :  { %2443 = vsyncadd [#allocation5], 4294967280 }
 0x711   :  { %1793 = vsyncpa [#allocation4], 1 }
 0x712   :  { %1794 = vsyncpa [#allocation7], 1 }
 0x713   :  { %1795 = vsyncpa [#allocation10], 1 }
 0x714   :  { %1796 = vsyncpa [#allocation5], 1 }

</bundles_post_ra>
